<compile_context>
chip_gen: v7x
topology: tpu7x:2x2x1
jax: 0.10.0
libtpu: 0.0.40
codegen_flags: <defaults>
</compile_context>

<pallas_src>
import math
import functools

import jax
import jax.numpy as jnp
from jax import lax
from jax.experimental import pallas as pl
from jax.experimental.pallas import tpu as pltpu


# Matmul operand dtype (MXU-native); accumulation is always f32 via
# preferred_element_type, and all softmax/LayerNorm element-wise math is f32.
COMPUTE_DTYPE = jnp.bfloat16


def _layernorm(x, gamma, beta, eps=1e-12):
    # x: [S, H] f32, gamma/beta: [1, H] f32
    u = jnp.mean(x, axis=-1, keepdims=True)
    d = x - u
    s = jnp.mean(d * d, axis=-1, keepdims=True)
    return gamma * (d * lax.rsqrt(s + eps)) + beta


# ---------------------------------------------------------------------------
# Fused multi-layer kernel: grid = (batch, layer); layer axis is sequential.
# ---------------------------------------------------------------------------
def encoder_stack_kernel(
    x_ref, mask_ref,
    wq_ref, bq_ref, wk_ref, bk_ref, wv_ref, bv_ref,
    wo_ref, bo_ref, g1_ref, be1_ref,
    wi_ref, bi_ref, wo2_ref, bo2_ref, g2_ref, be2_ref,
    y_ref, probs_ref,
    *, num_heads, head_dim,
):
    # x_ref / y_ref: [S, H]   mask_ref: [1, S]   probs_ref: [NH, S, S]
    l = pl.program_id(1)
    n_layers = pl.num_programs(1)

    # Layer 0: seed the resident hidden-state block (y_ref carries the activations
    # across all layer steps for this batch element; no HBM round-trips in between).
    @pl.when(l == 0)
    def _():
        y_ref[...] = x_ref[...]

    x = y_ref[...]                               # [S, H] f32 (carried hidden state)
    S, H = x.shape
    xm = x.astype(COMPUTE_DTYPE)

    def dense(a_bf16, w_ref, b_ref):
        # bf16 operands, f32 MXU accumulation, f32 bias add.
        return (jnp.dot(a_bf16, w_ref[...], preferred_element_type=jnp.float32)
                + b_ref[...])

    # --- Self attention: Q/K/V projections (single big matmuls) -------------
    q = dense(xm, wq_ref, bq_ref)                # [S, H] f32
    k = dense(xm, wk_ref, bk_ref)
    v = dense(xm, wv_ref, bv_ref)

    # Batched over heads: [S, H] -> [NH, S, hd]
    qh = jnp.transpose(q.reshape(S, num_heads, head_dim), (1, 0, 2)).astype(COMPUTE_DTYPE)
    kh = jnp.transpose(k.reshape(S, num_heads, head_dim), (1, 0, 2)).astype(COMPUTE_DTYPE)
    vh = jnp.transpose(v.reshape(S, num_heads, head_dim), (1, 0, 2)).astype(COMPUTE_DTYPE)

    scale = 1.0 / math.sqrt(head_dim)
    mask_b = mask_ref[...].reshape(1, 1, S)      # additive per-key mask, hoisted once

    # scores: [NH, S, S] in one batched matmul
    scores = jnp.einsum('hqd,hkd->hqk', qh, kh,
                        preferred_element_type=jnp.float32) * scale + mask_b

    # Softmax over keys (f32, max-subtracted), reciprocal-multiply via EUP.
    m = jnp.max(scores, axis=-1, keepdims=True)
    e = jnp.exp(scores - m)
    denom = jnp.sum(e, axis=-1, keepdims=True)
    p = e * pl.reciprocal(denom, approx=True)    # [NH, S, S] == attention_probs_0

    # Context: one batched matmul, then merge heads back to [S, H].
    ctx = jnp.einsum('hqk,hkd->hqd', p.astype(COMPUTE_DTYPE), vh,
                     preferred_element_type=jnp.float32)
    ctx = jnp.transpose(ctx, (1, 0, 2)).reshape(S, H)

    # --- SelfOutput: dense + residual + LayerNorm ---------------------------
    attn_out = dense(ctx.astype(COMPUTE_DTYPE), wo_ref, bo_ref)
    h1 = _layernorm(attn_out + x, g1_ref[...], be1_ref[...])

    # --- Intermediate: dense + ReLU -----------------------------------------
    inter = jnp.maximum(dense(h1.astype(COMPUTE_DTYPE), wi_ref, bi_ref), 0.0)

    # --- Output: dense + residual + LayerNorm --------------------------------
    out = dense(inter.astype(COMPUTE_DTYPE), wo2_ref, bo2_ref)
    h2 = _layernorm(out + h1, g2_ref[...], be2_ref[...])

    # Carry hidden state to the next layer step (and to HBM at the end of the chain).
    y_ref[...] = h2

    # Only the last layer's attention probs are live; single lane-dense store.
    @pl.when(l == n_layers - 1)
    def _():
        probs_ref[...] = p


# ---------------------------------------------------------------------------
# Wrapper: one pallas_call for the whole stack.
# ---------------------------------------------------------------------------
def encoder_multiple_layers(x, attention_mask, params, *, num_heads):
    """x: [B, S, H] f32; attention_mask: additive BERT mask [B, 1, 1, S]."""
    B, S, H = x.shape
    L = params["wq"].shape[0]
    I = params["wi"].shape[2]
    head_dim = H // num_heads
    mask3 = attention_mask.reshape(B, 1, S).astype(jnp.float32)

    def xspec():
        return pl.BlockSpec((None, S, H), lambda b, l: (b, 0, 0))

    def lspec(*shape):  # per-layer stacked param [L, *shape], indexed by layer step
        zeros = (0,) * len(shape)
        return pl.BlockSpec((None,) + shape, lambda b, l: (l,) + zeros)

    in_specs = [
        xspec(),                                            # hidden_states
        pl.BlockSpec((None, 1, S), lambda b, l: (b, 0, 0)),  # additive key mask
        lspec(H, H), lspec(1, H),                            # Wq, bq
        lspec(H, H), lspec(1, H),                            # Wk, bk
        lspec(H, H), lspec(1, H),                            # Wv, bv
        lspec(H, H), lspec(1, H),                            # Wo, bo (attn output dense)
        lspec(1, H), lspec(1, H),                            # LN1 gamma, beta
        lspec(H, I), lspec(1, I),                            # Wi, bi (intermediate)
        lspec(I, H), lspec(1, H),                            # Wo2, bo2 (output dense)
        lspec(1, H), lspec(1, H),                            # LN2 gamma, beta
    ]
    out_specs = [
        xspec(),                                                        # final layer output
        pl.BlockSpec((None, num_heads, S, S), lambda b, l: (b, 0, 0, 0)),  # last-layer probs
    ]
    out_shape = [
        jax.ShapeDtypeStruct((B, S, H), jnp.float32),
        jax.ShapeDtypeStruct((B, num_heads, S, S), jnp.float32),
    ]

    kernel = functools.partial(encoder_stack_kernel,
                               num_heads=num_heads, head_dim=head_dim)

    y, probs = pl.pallas_call(
        kernel,
        out_shape=out_shape,
        grid_spec=pltpu.PrefetchScalarGridSpec(
            num_scalar_prefetch=0,
            grid=(B, L),                     # layer axis innermost (sequential carry)
            in_specs=in_specs,
            out_specs=out_specs,
        ),
        compiler_params=pltpu.CompilerParams(
            dimension_semantics=("parallel", "arbitrary"),
        ),
    )(
        x, mask3,
        params["wq"], params["bq"], params["wk"], params["bk"],
        params["wv"], params["bv"],
        params["wo"], params["bo"], params["g1"], params["be1"],
        params["wi"], params["bi"], params["wo2"], params["bo2"],
        params["g2"], params["be2"],
    )
    return y, probs


# ---------------------------------------------------------------------------
# Deterministic synthetic parameters, stacked along a leading layer axis.
# Weight matrices stored bf16 (halves DMA, native MXU); biases / LN params f32.
# ---------------------------------------------------------------------------
def init_stacked_params(key, n_layer, hidden_size, intermediate_size):
    H, I = hidden_size, intermediate_size
    ks = jax.random.split(key, 9)

    def w(k, shape):
        return (0.05 * jax.random.normal(k, (n_layer,) + shape)).astype(COMPUTE_DTYPE)

    def bvec(k, n):
        return (0.05 * jax.random.normal(k, (n_layer, 1, n))).astype(jnp.float32)

    zeros = lambda n: jnp.zeros((n_layer, 1, n), jnp.float32)
    ones = lambda n: jnp.ones((n_layer, 1, n), jnp.float32)

    return dict(
        wq=w(ks[0], (H, H)), bq=bvec(ks[1], H),
        wk=w(ks[2], (H, H)), bk=bvec(ks[3], H),
        wv=w(ks[4], (H, H)), bv=bvec(ks[5], H),
        wo=w(ks[6], (H, H)), bo=zeros(H),
        g1=ones(H), be1=zeros(H),
        wi=w(ks[7], (H, I)), bi=zeros(I),
        wo2=w(ks[8], (I, H)), bo2=zeros(H),
        g2=ones(H), be2=zeros(H),
    )


# ---------------------------------------------------------------------------
# Main
# ---------------------------------------------------------------------------
if __name__ == "__main__":
    n_layer = 2
    B, S, H = 2, 16, 32
    num_heads = 4
    intermediate_size = 64

    root = jax.random.PRNGKey(0)
    k_x, k_p = jax.random.split(root)

    hidden_states = jax.random.normal(k_x, (B, S, H), dtype=jnp.float32)

    # BERT-style extended additive mask: 0 for attended positions, -10000 for padding.
    pad = jnp.zeros((B, S), dtype=jnp.float32).at[:, S - 3:].set(1.0)  # last 3 tokens masked
    attention_mask = (pad * -10000.0).reshape(B, 1, 1, S)

    params = init_stacked_params(k_p, n_layer, H, intermediate_size)

    y, attn_probs = encoder_multiple_layers(
        hidden_states, attention_mask, params, num_heads=num_heads
    )
    jax.block_until_ready(y)
    jax.block_until_ready(attn_probs)

    assert y.shape == (B, S, H)
    assert attn_probs.shape == (B, num_heads, S, S)
    assert bool(jnp.all(jnp.isfinite(y)))
    assert bool(jnp.all(jnp.isfinite(attn_probs)))
    print("KERNEL_OK")
</pallas_src>

<mosaic_0001>
module attributes {stable_mosaic.version = 11 : i64} {
  func.func @encoder_stack_kernel(%arg0: i32, %arg1: i32, %arg2: memref<1x16x32xf32, #tpu.memory_space<vmem>>, %arg3: memref<1x1x16xf32, #tpu.memory_space<vmem>>, %arg4: memref<1x32x32xbf16, #tpu.memory_space<vmem>>, %arg5: memref<1x1x32xf32, #tpu.memory_space<vmem>>, %arg6: memref<1x32x32xbf16, #tpu.memory_space<vmem>>, %arg7: memref<1x1x32xf32, #tpu.memory_space<vmem>>, %arg8: memref<1x32x32xbf16, #tpu.memory_space<vmem>>, %arg9: memref<1x1x32xf32, #tpu.memory_space<vmem>>, %arg10: memref<1x32x32xbf16, #tpu.memory_space<vmem>>, %arg11: memref<1x1x32xf32, #tpu.memory_space<vmem>>, %arg12: memref<1x1x32xf32, #tpu.memory_space<vmem>>, %arg13: memref<1x1x32xf32, #tpu.memory_space<vmem>>, %arg14: memref<1x32x64xbf16, #tpu.memory_space<vmem>>, %arg15: memref<1x1x64xf32, #tpu.memory_space<vmem>>, %arg16: memref<1x64x32xbf16, #tpu.memory_space<vmem>>, %arg17: memref<1x1x32xf32, #tpu.memory_space<vmem>>, %arg18: memref<1x1x32xf32, #tpu.memory_space<vmem>>, %arg19: memref<1x1x32xf32, #tpu.memory_space<vmem>>, %arg20: memref<1x16x32xf32, #tpu.memory_space<vmem>>, %arg21: memref<1x4x16x16xf32, #tpu.memory_space<vmem>>) attributes {dimension_semantics = [#tpu.dimension_semantics<parallel>, #tpu.dimension_semantics<arbitrary>], iteration_bounds = array<i64: 2, 2>, scalar_prefetch = 0 : i64, scratch_operands = 0 : i64, tpu.core_type = #tpu.core_type<tc>, window_params = [{transform_indices = @transform_0, window_bounds = array<i64: 1, 16, 32>}, {transform_indices = @transform_1, window_bounds = array<i64: 1, 1, 16>}, {transform_indices = @transform_2, window_bounds = array<i64: 1, 32, 32>}, {transform_indices = @transform_3, window_bounds = array<i64: 1, 1, 32>}, {transform_indices = @transform_4, window_bounds = array<i64: 1, 32, 32>}, {transform_indices = @transform_5, window_bounds = array<i64: 1, 1, 32>}, {transform_indices = @transform_6, window_bounds = array<i64: 1, 32, 32>}, {transform_indices = @transform_7, window_bounds = array<i64: 1, 1, 32>}, {transform_indices = @transform_8, window_bounds = array<i64: 1, 32, 32>}, {transform_indices = @transform_9, window_bounds = array<i64: 1, 1, 32>}, {transform_indices = @transform_10, window_bounds = array<i64: 1, 1, 32>}, {transform_indices = @transform_11, window_bounds = array<i64: 1, 1, 32>}, {transform_indices = @transform_12, window_bounds = array<i64: 1, 32, 64>}, {transform_indices = @transform_13, window_bounds = array<i64: 1, 1, 64>}, {transform_indices = @transform_14, window_bounds = array<i64: 1, 64, 32>}, {transform_indices = @transform_15, window_bounds = array<i64: 1, 1, 32>}, {transform_indices = @transform_16, window_bounds = array<i64: 1, 1, 32>}, {transform_indices = @transform_17, window_bounds = array<i64: 1, 1, 32>}, {transform_indices = @transform_18, window_bounds = array<i64: 1, 16, 32>}, {transform_indices = @transform_19, window_bounds = array<i64: 1, 4, 16, 16>}]} {
    %c0_i32 = arith.constant 0 : i32
    %0 = arith.cmpi eq, %arg1, %c0_i32 : i32
    %1 = arith.extui %0 : i1 to i32
    %c0_i32_0 = arith.constant 0 : i32
    %2 = arith.cmpi ne, %1, %c0_i32_0 : i32
    scf.if %2 {
      %c0_79 = arith.constant 0 : index
      %c0_80 = arith.constant 0 : index
      %c0_81 = arith.constant 0 : index
      %140 = vector.load %arg2[%c0_79, %c0_80, %c0_81] : memref<1x16x32xf32, #tpu.memory_space<vmem>>, vector<1x16x32xf32>
      %141 = vector.shape_cast %140 : vector<1x16x32xf32> to vector<16x32xf32>
      %c0_82 = arith.constant 0 : index
      %c0_83 = arith.constant 0 : index
      %c0_84 = arith.constant 0 : index
      %142 = vector.load %arg20[%c0_82, %c0_83, %c0_84] : memref<1x16x32xf32, #tpu.memory_space<vmem>>, vector<1x16x32xf32>
      %143 = vector.shape_cast %142 : vector<1x16x32xf32> to vector<16x32xf32>
      %144 = vector.shape_cast %141 : vector<16x32xf32> to vector<1x16x32xf32>
      tpu.vector_store %arg20[%c0_82, %c0_83, %c0_84], %144 {strides = array<i32>} : memref<1x16x32xf32, #tpu.memory_space<vmem>>, vector<1x16x32xf32>,
    } else {
    }
    %c0 = arith.constant 0 : index
    %c0_1 = arith.constant 0 : index
    %c0_2 = arith.constant 0 : index
    %3 = vector.load %arg20[%c0, %c0_1, %c0_2] : memref<1x16x32xf32, #tpu.memory_space<vmem>>, vector<1x16x32xf32>
    %4 = vector.shape_cast %3 : vector<1x16x32xf32> to vector<16x32xf32>
    %5 = arith.truncf %4 : vector<16x32xf32> to vector<16x32xbf16>
    %c0_3 = arith.constant 0 : index
    %c0_4 = arith.constant 0 : index
    %c0_5 = arith.constant 0 : index
    %6 = vector.load %arg4[%c0_3, %c0_4, %c0_5] : memref<1x32x32xbf16, #tpu.memory_space<vmem>>, vector<1x32x32xbf16>
    %7 = vector.shape_cast %6 : vector<1x32x32xbf16> to vector<32x32xbf16>
    %cst = arith.constant dense<0.000000e+00> : vector<16x32xf32>
    %8 = tpu.matmul %5, %7, %cst {dimension_numbers = #tpu.dot_dimension_numbers<[1], [0], [0], [1], [0, 0, 1, 1], [], []>} : vector<16x32xbf16>, vector<32x32xbf16>, vector<16x32xf32> -> vector<16x32xf32>
    %c0_6 = arith.constant 0 : index
    %c0_7 = arith.constant 0 : index
    %c0_8 = arith.constant 0 : index
    %9 = vector.load %arg5[%c0_6, %c0_7, %c0_8] : memref<1x1x32xf32, #tpu.memory_space<vmem>>, vector<1x1x32xf32>
    %10 = vector.shape_cast %9 : vector<1x1x32xf32> to vector<1x32xf32>
    %11 = vector.broadcast %10 : vector<1x32xf32> to vector<16x32xf32>
    %12 = arith.addf %8, %11 : vector<16x32xf32>
    %c0_9 = arith.constant 0 : index
    %c0_10 = arith.constant 0 : index
    %c0_11 = arith.constant 0 : index
    %13 = vector.load %arg6[%c0_9, %c0_10, %c0_11] : memref<1x32x32xbf16, #tpu.memory_space<vmem>>, vector<1x32x32xbf16>
    %14 = vector.shape_cast %13 : vector<1x32x32xbf16> to vector<32x32xbf16>
    %cst_12 = arith.constant dense<0.000000e+00> : vector<16x32xf32>
    %15 = tpu.matmul %5, %14, %cst_12 {dimension_numbers = #tpu.dot_dimension_numbers<[1], [0], [0], [1], [0, 0, 1, 1], [], []>} : vector<16x32xbf16>, vector<32x32xbf16>, vector<16x32xf32> -> vector<16x32xf32>
    %c0_13 = arith.constant 0 : index
    %c0_14 = arith.constant 0 : index
    %c0_15 = arith.constant 0 : index
    %16 = vector.load %arg7[%c0_13, %c0_14, %c0_15] : memref<1x1x32xf32, #tpu.memory_space<vmem>>, vector<1x1x32xf32>
    %17 = vector.shape_cast %16 : vector<1x1x32xf32> to vector<1x32xf32>
    %18 = vector.broadcast %17 : vector<1x32xf32> to vector<16x32xf32>
    %19 = arith.addf %15, %18 : vector<16x32xf32>
    %c0_16 = arith.constant 0 : index
    %c0_17 = arith.constant 0 : index
    %c0_18 = arith.constant 0 : index
    %20 = vector.load %arg8[%c0_16, %c0_17, %c0_18] : memref<1x32x32xbf16, #tpu.memory_space<vmem>>, vector<1x32x32xbf16>
    %21 = vector.shape_cast %20 : vector<1x32x32xbf16> to vector<32x32xbf16>
    %cst_19 = arith.constant dense<0.000000e+00> : vector<16x32xf32>
    %22 = tpu.matmul %5, %21, %cst_19 {dimension_numbers = #tpu.dot_dimension_numbers<[1], [0], [0], [1], [0, 0, 1, 1], [], []>} : vector<16x32xbf16>, vector<32x32xbf16>, vector<16x32xf32> -> vector<16x32xf32>
    %c0_20 = arith.constant 0 : index
    %c0_21 = arith.constant 0 : index
    %c0_22 = arith.constant 0 : index
    %23 = vector.load %arg9[%c0_20, %c0_21, %c0_22] : memref<1x1x32xf32, #tpu.memory_space<vmem>>, vector<1x1x32xf32>
    %24 = vector.shape_cast %23 : vector<1x1x32xf32> to vector<1x32xf32>
    %25 = vector.broadcast %24 : vector<1x32xf32> to vector<16x32xf32>
    %26 = arith.addf %22, %25 : vector<16x32xf32>
    %27 = vector.shape_cast %12 : vector<16x32xf32> to vector<16x4x8xf32>
    %28 = tpu.transpose %27, [1, 0, 2] : vector<16x4x8xf32> -> vector<4x16x8xf32>
    %29 = arith.truncf %28 : vector<4x16x8xf32> to vector<4x16x8xbf16>
    %30 = vector.shape_cast %19 : vector<16x32xf32> to vector<16x4x8xf32>
    %31 = tpu.transpose %30, [1, 0, 2] : vector<16x4x8xf32> -> vector<4x16x8xf32>
    %32 = arith.truncf %31 : vector<4x16x8xf32> to vector<4x16x8xbf16>
    %33 = vector.shape_cast %26 : vector<16x32xf32> to vector<16x4x8xf32>
    %34 = tpu.transpose %33, [1, 0, 2] : vector<16x4x8xf32> -> vector<4x16x8xf32>
    %35 = arith.truncf %34 : vector<4x16x8xf32> to vector<4x16x8xbf16>
    %c0_23 = arith.constant 0 : index
    %c0_24 = arith.constant 0 : index
    %c0_25 = arith.constant 0 : index
    %36 = vector.load %arg3[%c0_23, %c0_24, %c0_25] : memref<1x1x16xf32, #tpu.memory_space<vmem>>, vector<1x1x16xf32>
    %37 = vector.shape_cast %36 : vector<1x1x16xf32> to vector<1x16xf32>
    %38 = vector.shape_cast %37 : vector<1x16xf32> to vector<1x1x16xf32>
    "tpu.trace_start"() <{level = 10 : i32, message = "hqd,hkd->hqk"}> : () -> ()
    %cst_26 = arith.constant dense<0.000000e+00> : vector<4x16x16xf32>
    %39 = tpu.matmul %29, %32, %cst_26 {dimension_numbers = #tpu.dot_dimension_numbers<[2], [2], [1], [1], [0, 0, 0, 1, 1, 1], [0], [0]>} : vector<4x16x8xbf16>, vector<4x16x8xbf16>, vector<4x16x16xf32> -> vector<4x16x16xf32>
    "tpu.trace_stop"() : () -> ()
    %cst_27 = arith.constant 0.353553385 : f32
    %40 = vector.broadcast %cst_27 : f32 to vector<4x16x16xf32>
    %41 = arith.mulf %39, %40 : vector<4x16x16xf32>
    %42 = vector.broadcast %38 : vector<1x1x16xf32> to vector<4x16x16xf32>
    %43 = arith.addf %41, %42 : vector<4x16x16xf32>
    %cst_28 = arith.constant dense<0xFF800000> : vector<4x16xf32>
    %44 = vector.multi_reduction <maximumf>, %43, %cst_28 [2] : vector<4x16x16xf32> to vector<4x16xf32>
    %45 = vector.shape_cast %44 : vector<4x16xf32> to vector<4x16x1xf32>
    %46 = vector.broadcast %45 : vector<4x16x1xf32> to vector<4x16x16xf32>
    %47 = arith.subf %43, %46 : vector<4x16x16xf32>
    %48 = math.exp %47 : vector<4x16x16xf32>
    %cst_29 = arith.constant dense<0.000000e+00> : vector<4x16xf32>
    %49 = vector.multi_reduction <add>, %48, %cst_29 [2] : vector<4x16x16xf32> to vector<4x16xf32>
    %50 = vector.shape_cast %49 : vector<4x16xf32> to vector<4x16x1xf32>
    %51 = tpu.reciprocal %50 {approx = true} : vector<4x16x1xf32> -> vector<4x16x1xf32>
    %52 = vector.broadcast %51 : vector<4x16x1xf32> to vector<4x16x16xf32>
    %53 = arith.mulf %48, %52 : vector<4x16x16xf32>
    %54 = arith.truncf %53 : vector<4x16x16xf32> to vector<4x16x16xbf16>
    "tpu.trace_start"() <{level = 10 : i32, message = "hqk,hkd->hqd"}> : () -> ()
    %cst_30 = arith.constant dense<0.000000e+00> : vector<4x16x8xf32>
    %55 = tpu.matmul %54, %35, %cst_30 {dimension_numbers = #tpu.dot_dimension_numbers<[2], [1], [1], [2], [0, 0, 0, 1, 1, 2], [0], [0]>} : vector<4x16x16xbf16>, vector<4x16x8xbf16>, vector<4x16x8xf32> -> vector<4x16x8xf32>
    "tpu.trace_stop"() : () -> ()
    %56 = tpu.transpose %55, [1, 0, 2] : vector<4x16x8xf32> -> vector<16x4x8xf32>
    %57 = vector.shape_cast %56 : vector<16x4x8xf32> to vector<16x32xf32>
    %58 = arith.truncf %57 : vector<16x32xf32> to vector<16x32xbf16>
    %c0_31 = arith.constant 0 : index
    %c0_32 = arith.constant 0 : index
    %c0_33 = arith.constant 0 : index
    %59 = vector.load %arg10[%c0_31, %c0_32, %c0_33] : memref<1x32x32xbf16, #tpu.memory_space<vmem>>, vector<1x32x32xbf16>
    %60 = vector.shape_cast %59 : vector<1x32x32xbf16> to vector<32x32xbf16>
    %cst_34 = arith.constant dense<0.000000e+00> : vector<16x32xf32>
    %61 = tpu.matmul %58, %60, %cst_34 {dimension_numbers = #tpu.dot_dimension_numbers<[1], [0], [0], [1], [0, 0, 1, 1], [], []>} : vector<16x32xbf16>, vector<32x32xbf16>, vector<16x32xf32> -> vector<16x32xf32>
    %c0_35 = arith.constant 0 : index
    %c0_36 = arith.constant 0 : index
    %c0_37 = arith.constant 0 : index
    %62 = vector.load %arg11[%c0_35, %c0_36, %c0_37] : memref<1x1x32xf32, #tpu.memory_space<vmem>>, vector<1x1x32xf32>
    %63 = vector.shape_cast %62 : vector<1x1x32xf32> to vector<1x32xf32>
    %64 = vector.broadcast %63 : vector<1x32xf32> to vector<16x32xf32>
    %65 = arith.addf %61, %64 : vector<16x32xf32>
    %66 = arith.addf %65, %4 : vector<16x32xf32>
    %c0_38 = arith.constant 0 : index
    %c0_39 = arith.constant 0 : index
    %c0_40 = arith.constant 0 : index
    %67 = vector.load %arg12[%c0_38, %c0_39, %c0_40] : memref<1x1x32xf32, #tpu.memory_space<vmem>>, vector<1x1x32xf32>
    %68 = vector.shape_cast %67 : vector<1x1x32xf32> to vector<1x32xf32>
    %c0_41 = arith.constant 0 : index
    %c0_42 = arith.constant 0 : index
    %c0_43 = arith.constant 0 : index
    %69 = vector.load %arg13[%c0_41, %c0_42, %c0_43] : memref<1x1x32xf32, #tpu.memory_space<vmem>>, vector<1x1x32xf32>
    %70 = vector.shape_cast %69 : vector<1x1x32xf32> to vector<1x32xf32>
    %cst_44 = arith.constant dense<0.000000e+00> : vector<16xf32>
    %71 = vector.multi_reduction <add>, %66, %cst_44 [1] : vector<16x32xf32> to vector<16xf32>
    %72 = vector.shape_cast %71 : vector<16xf32> to vector<16x1xf32>
    %cst_45 = arith.constant 3.200000e+01 : f32
    %73 = vector.broadcast %cst_45 : f32 to vector<16x1xf32>
    %74 = arith.divf %72, %73 : vector<16x1xf32>
    %75 = vector.broadcast %74 : vector<16x1xf32> to vector<16x32xf32>
    %76 = arith.subf %66, %75 : vector<16x32xf32>
    %77 = arith.mulf %76, %76 : vector<16x32xf32>
    %cst_46 = arith.constant dense<0.000000e+00> : vector<16xf32>
    %78 = vector.multi_reduction <add>, %77, %cst_46 [1] : vector<16x32xf32> to vector<16xf32>
    %79 = vector.shape_cast %78 : vector<16xf32> to vector<16x1xf32>
    %cst_47 = arith.constant 3.200000e+01 : f32
    %80 = vector.broadcast %cst_47 : f32 to vector<16x1xf32>
    %81 = arith.divf %79, %80 : vector<16x1xf32>
    %cst_48 = arith.constant 9.99999996E-13 : f32
    %82 = vector.broadcast %cst_48 : f32 to vector<16x1xf32>
    %83 = arith.addf %81, %82 : vector<16x1xf32>
    %84 = math.rsqrt %83 : vector<16x1xf32>
    %85 = vector.broadcast %84 : vector<16x1xf32> to vector<16x32xf32>
    %86 = arith.mulf %76, %85 : vector<16x32xf32>
    %87 = vector.broadcast %68 : vector<1x32xf32> to vector<16x32xf32>
    %88 = arith.mulf %87, %86 : vector<16x32xf32>
    %89 = vector.broadcast %70 : vector<1x32xf32> to vector<16x32xf32>
    %90 = arith.addf %88, %89 : vector<16x32xf32>
    %91 = arith.truncf %90 : vector<16x32xf32> to vector<16x32xbf16>
    %c0_49 = arith.constant 0 : index
    %c0_50 = arith.constant 0 : index
    %c0_51 = arith.constant 0 : index
    %92 = vector.load %arg14[%c0_49, %c0_50, %c0_51] : memref<1x32x64xbf16, #tpu.memory_space<vmem>>, vector<1x32x64xbf16>
    %93 = vector.shape_cast %92 : vector<1x32x64xbf16> to vector<32x64xbf16>
    %cst_52 = arith.constant dense<0.000000e+00> : vector<16x64xf32>
    %94 = tpu.matmul %91, %93, %cst_52 {dimension_numbers = #tpu.dot_dimension_numbers<[1], [0], [0], [1], [0, 0, 1, 1], [], []>} : vector<16x32xbf16>, vector<32x64xbf16>, vector<16x64xf32> -> vector<16x64xf32>
    %c0_53 = arith.constant 0 : index
    %c0_54 = arith.constant 0 : index
    %c0_55 = arith.constant 0 : index
    %95 = vector.load %arg15[%c0_53, %c0_54, %c0_55] : memref<1x1x64xf32, #tpu.memory_space<vmem>>, vector<1x1x64xf32>
    %96 = vector.shape_cast %95 : vector<1x1x64xf32> to vector<1x64xf32>
    %97 = vector.broadcast %96 : vector<1x64xf32> to vector<16x64xf32>
    %98 = arith.addf %94, %97 : vector<16x64xf32>
    %cst_56 = arith.constant 0.000000e+00 : f32
    %99 = vector.broadcast %cst_56 : f32 to vector<16x64xf32>
    %100 = arith.maximumf %98, %99 : vector<16x64xf32>
    %101 = arith.truncf %100 : vector<16x64xf32> to vector<16x64xbf16>
    %c0_57 = arith.constant 0 : index
    %c0_58 = arith.constant 0 : index
    %c0_59 = arith.constant 0 : index
    %102 = vector.load %arg16[%c0_57, %c0_58, %c0_59] : memref<1x64x32xbf16, #tpu.memory_space<vmem>>, vector<1x64x32xbf16>
    %103 = vector.shape_cast %102 : vector<1x64x32xbf16> to vector<64x32xbf16>
    %cst_60 = arith.constant dense<0.000000e+00> : vector<16x32xf32>
    %104 = tpu.matmul %101, %103, %cst_60 {dimension_numbers = #tpu.dot_dimension_numbers<[1], [0], [0], [1], [0, 0, 1, 1], [], []>} : vector<16x64xbf16>, vector<64x32xbf16>, vector<16x32xf32> -> vector<16x32xf32>
    %c0_61 = arith.constant 0 : index
    %c0_62 = arith.constant 0 : index
    %c0_63 = arith.constant 0 : index
    %105 = vector.load %arg17[%c0_61, %c0_62, %c0_63] : memref<1x1x32xf32, #tpu.memory_space<vmem>>, vector<1x1x32xf32>
    %106 = vector.shape_cast %105 : vector<1x1x32xf32> to vector<1x32xf32>
    %107 = vector.broadcast %106 : vector<1x32xf32> to vector<16x32xf32>
    %108 = arith.addf %104, %107 : vector<16x32xf32>
    %109 = arith.addf %108, %90 : vector<16x32xf32>
    %c0_64 = arith.constant 0 : index
    %c0_65 = arith.constant 0 : index
    %c0_66 = arith.constant 0 : index
    %110 = vector.load %arg18[%c0_64, %c0_65, %c0_66] : memref<1x1x32xf32, #tpu.memory_space<vmem>>, vector<1x1x32xf32>
    %111 = vector.shape_cast %110 : vector<1x1x32xf32> to vector<1x32xf32>
    %c0_67 = arith.constant 0 : index
    %c0_68 = arith.constant 0 : index
    %c0_69 = arith.constant 0 : index
    %112 = vector.load %arg19[%c0_67, %c0_68, %c0_69] : memref<1x1x32xf32, #tpu.memory_space<vmem>>, vector<1x1x32xf32>
    %113 = vector.shape_cast %112 : vector<1x1x32xf32> to vector<1x32xf32>
    %cst_70 = arith.constant dense<0.000000e+00> : vector<16xf32>
    %114 = vector.multi_reduction <add>, %109, %cst_70 [1] : vector<16x32xf32> to vector<16xf32>
    %115 = vector.shape_cast %114 : vector<16xf32> to vector<16x1xf32>
    %cst_71 = arith.constant 3.200000e+01 : f32
    %116 = vector.broadcast %cst_71 : f32 to vector<16x1xf32>
    %117 = arith.divf %115, %116 : vector<16x1xf32>
    %118 = vector.broadcast %117 : vector<16x1xf32> to vector<16x32xf32>
    %119 = arith.subf %109, %118 : vector<16x32xf32>
    %120 = arith.mulf %119, %119 : vector<16x32xf32>
    %cst_72 = arith.constant dense<0.000000e+00> : vector<16xf32>
    %121 = vector.multi_reduction <add>, %120, %cst_72 [1] : vector<16x32xf32> to vector<16xf32>
    %122 = vector.shape_cast %121 : vector<16xf32> to vector<16x1xf32>
    %cst_73 = arith.constant 3.200000e+01 : f32
    %123 = vector.broadcast %cst_73 : f32 to vector<16x1xf32>
    %124 = arith.divf %122, %123 : vector<16x1xf32>
    %cst_74 = arith.constant 9.99999996E-13 : f32
    %125 = vector.broadcast %cst_74 : f32 to vector<16x1xf32>
    %126 = arith.addf %124, %125 : vector<16x1xf32>
    %127 = math.rsqrt %126 : vector<16x1xf32>
    %128 = vector.broadcast %127 : vector<16x1xf32> to vector<16x32xf32>
    %129 = arith.mulf %119, %128 : vector<16x32xf32>
    %130 = vector.broadcast %111 : vector<1x32xf32> to vector<16x32xf32>
    %131 = arith.mulf %130, %129 : vector<16x32xf32>
    %132 = vector.broadcast %113 : vector<1x32xf32> to vector<16x32xf32>
    %133 = arith.addf %131, %132 : vector<16x32xf32>
    %c0_75 = arith.constant 0 : index
    %c0_76 = arith.constant 0 : index
    %c0_77 = arith.constant 0 : index
    %134 = vector.load %arg20[%c0_75, %c0_76, %c0_77] : memref<1x16x32xf32, #tpu.memory_space<vmem>>, vector<1x16x32xf32>
    %135 = vector.shape_cast %134 : vector<1x16x32xf32> to vector<16x32xf32>
    %136 = vector.shape_cast %133 : vector<16x32xf32> to vector<1x16x32xf32>
    tpu.vector_store %arg20[%c0_75, %c0_76, %c0_77], %136 {strides = array<i32>} : memref<1x16x32xf32, #tpu.memory_space<vmem>>, vector<1x16x32xf32>,
    %c1_i32 = arith.constant 1 : i32
    %137 = arith.cmpi eq, %arg1, %c1_i32 : i32
    %138 = arith.extui %137 : i1 to i32
    %c0_i32_78 = arith.constant 0 : i32
    %139 = arith.cmpi ne, %138, %c0_i32_78 : i32
    scf.if %139 {
      %c0_79 = arith.constant 0 : index
      %c0_80 = arith.constant 0 : index
      %c0_81 = arith.constant 0 : index
      %c0_82 = arith.constant 0 : index
      %140 = vector.load %arg21[%c0_79, %c0_80, %c0_81, %c0_82] : memref<1x4x16x16xf32, #tpu.memory_space<vmem>>, vector<1x4x16x16xf32>
      %141 = vector.shape_cast %140 : vector<1x4x16x16xf32> to vector<4x16x16xf32>
      %142 = vector.shape_cast %53 : vector<4x16x16xf32> to vector<1x4x16x16xf32>
      tpu.vector_store %arg21[%c0_79, %c0_80, %c0_81, %c0_82], %142 {strides = array<i32>} : memref<1x4x16x16xf32, #tpu.memory_space<vmem>>, vector<1x4x16x16xf32>,
    } else {
    }
    return
  }
  func.func @transform_0(%arg0: i32, %arg1: i32) -> (i32, i32, i32) {
    %c0_i32 = arith.constant 0 : i32
    %c0_i32_0 = arith.constant 0 : i32
    %c0_i32_1 = arith.constant 0 : i32
    return %arg0, %c0_i32, %c0_i32_0 : i32, i32, i32
  }
  func.func @transform_1(%arg0: i32, %arg1: i32) -> (i32, i32, i32) {
    %c0_i32 = arith.constant 0 : i32
    %c0_i32_0 = arith.constant 0 : i32
    %c0_i32_1 = arith.constant 0 : i32
    return %arg0, %c0_i32, %c0_i32_0 : i32, i32, i32
  }
  func.func @transform_2(%arg0: i32, %arg1: i32) -> (i32, i32, i32) {
    %c0_i32 = arith.constant 0 : i32
    %c0_i32_0 = arith.constant 0 : i32
    %c0_i32_1 = arith.constant 0 : i32
    return %arg1, %c0_i32, %c0_i32_0 : i32, i32, i32
  }
  func.func @transform_3(%arg0: i32, %arg1: i32) -> (i32, i32, i32) {
    %c0_i32 = arith.constant 0 : i32
    %c0_i32_0 = arith.constant 0 : i32
    %c0_i32_1 = arith.constant 0 : i32
    return %arg1, %c0_i32, %c0_i32_0 : i32, i32, i32
  }
  func.func @transform_4(%arg0: i32, %arg1: i32) -> (i32, i32, i32) {
    %c0_i32 = arith.constant 0 : i32
    %c0_i32_0 = arith.constant 0 : i32
    %c0_i32_1 = arith.constant 0 : i32
    return %arg1, %c0_i32, %c0_i32_0 : i32, i32, i32
  }
  func.func @transform_5(%arg0: i32, %arg1: i32) -> (i32, i32, i32) {
    %c0_i32 = arith.constant 0 : i32
    %c0_i32_0 = arith.constant 0 : i32
    %c0_i32_1 = arith.constant 0 : i32
    return %arg1, %c0_i32, %c0_i32_0 : i32, i32, i32
  }
  func.func @transform_6(%arg0: i32, %arg1: i32) -> (i32, i32, i32) {
    %c0_i32 = arith.constant 0 : i32
    %c0_i32_0 = arith.constant 0 : i32
    %c0_i32_1 = arith.constant 0 : i32
    return %arg1, %c0_i32, %c0_i32_0 : i32, i32, i32
  }
  func.func @transform_7(%arg0: i32, %arg1: i32) -> (i32, i32, i32) {
    %c0_i32 = arith.constant 0 : i32
    %c0_i32_0 = arith.constant 0 : i32
    %c0_i32_1 = arith.constant 0 : i32
    return %arg1, %c0_i32, %c0_i32_0 : i32, i32, i32
  }
  func.func @transform_8(%arg0: i32, %arg1: i32) -> (i32, i32, i32) {
    %c0_i32 = arith.constant 0 : i32
    %c0_i32_0 = arith.constant 0 : i32
    %c0_i32_1 = arith.constant 0 : i32
    return %arg1, %c0_i32, %c0_i32_0 : i32, i32, i32
  }
  func.func @transform_9(%arg0: i32, %arg1: i32) -> (i32, i32, i32) {
    %c0_i32 = arith.constant 0 : i32
    %c0_i32_0 = arith.constant 0 : i32
    %c0_i32_1 = arith.constant 0 : i32
    return %arg1, %c0_i32, %c0_i32_0 : i32, i32, i32
  }
  func.func @transform_10(%arg0: i32, %arg1: i32) -> (i32, i32, i32) {
    %c0_i32 = arith.constant 0 : i32
    %c0_i32_0 = arith.constant 0 : i32
    %c0_i32_1 = arith.constant 0 : i32
    return %arg1, %c0_i32, %c0_i32_0 : i32, i32, i32
  }
  func.func @transform_11(%arg0: i32, %arg1: i32) -> (i32, i32, i32) {
    %c0_i32 = arith.constant 0 : i32
    %c0_i32_0 = arith.constant 0 : i32
    %c0_i32_1 = arith.constant 0 : i32
    return %arg1, %c0_i32, %c0_i32_0 : i32, i32, i32
  }
  func.func @transform_12(%arg0: i32, %arg1: i32) -> (i32, i32, i32) {
    %c0_i32 = arith.constant 0 : i32
    %c0_i32_0 = arith.constant 0 : i32
    %c0_i32_1 = arith.constant 0 : i32
    return %arg1, %c0_i32, %c0_i32_0 : i32, i32, i32
  }
  func.func @transform_13(%arg0: i32, %arg1: i32) -> (i32, i32, i32) {
    %c0_i32 = arith.constant 0 : i32
    %c0_i32_0 = arith.constant 0 : i32
    %c0_i32_1 = arith.constant 0 : i32
    return %arg1, %c0_i32, %c0_i32_0 : i32, i32, i32
  }
  func.func @transform_14(%arg0: i32, %arg1: i32) -> (i32, i32, i32) {
    %c0_i32 = arith.constant 0 : i32
    %c0_i32_0 = arith.constant 0 : i32
    %c0_i32_1 = arith.constant 0 : i32
    return %arg1, %c0_i32, %c0_i32_0 : i32, i32, i32
  }
  func.func @transform_15(%arg0: i32, %arg1: i32) -> (i32, i32, i32) {
    %c0_i32 = arith.constant 0 : i32
    %c0_i32_0 = arith.constant 0 : i32
    %c0_i32_1 = arith.constant 0 : i32
    return %arg1, %c0_i32, %c0_i32_0 : i32, i32, i32
  }
  func.func @transform_16(%arg0: i32, %arg1: i32) -> (i32, i32, i32) {
    %c0_i32 = arith.constant 0 : i32
    %c0_i32_0 = arith.constant 0 : i32
    %c0_i32_1 = arith.constant 0 : i32
    return %arg1, %c0_i32, %c0_i32_0 : i32, i32, i32
  }
  func.func @transform_17(%arg0: i32, %arg1: i32) -> (i32, i32, i32) {
    %c0_i32 = arith.constant 0 : i32
    %c0_i32_0 = arith.constant 0 : i32
    %c0_i32_1 = arith.constant 0 : i32
    return %arg1, %c0_i32, %c0_i32_0 : i32, i32, i32
  }
  func.func @transform_18(%arg0: i32, %arg1: i32) -> (i32, i32, i32) {
    %c0_i32 = arith.constant 0 : i32
    %c0_i32_0 = arith.constant 0 : i32
    %c0_i32_1 = arith.constant 0 : i32
    return %arg0, %c0_i32, %c0_i32_0 : i32, i32, i32
  }
  func.func @transform_19(%arg0: i32, %arg1: i32) -> (i32, i32, i32, i32) {
    %c0_i32 = arith.constant 0 : i32
    %c0_i32_0 = arith.constant 0 : i32
    %c0_i32_1 = arith.constant 0 : i32
    %c0_i32_2 = arith.constant 0 : i32
    return %arg0, %c0_i32, %c0_i32_0, %c0_i32_1 : i32, i32, i32, i32
  }
}

</mosaic_0001>

<bundles_post_ra>
// kernel: tpu_custom_call.1
= control target key start
LH: loop header
LB: loop body
LE: loop exit
PB: predicated region body
PF: predicated region fallthrough
CT: control target
= control target key end

     0   :  { %s5256_s0 = inlined_call_operand.vmem [shape: f32[2,16,32], index: 0, kind: input, shape index: {}]   ;;  %s5257_s1 = inlined_call_operand.vmem [shape: f32[2,1,16], index: 1, kind: input, shape index: {}]   ;;  %s5258_s2 = inlined_call_operand.vmem [shape: bf16[2,32,32], index: 2, kind: input, shape index: {}]   ;;  %s5259_s3 = inlined_call_operand.vmem [shape: f32[2,1,32], index: 3, kind: input, shape index: {}]   ;;  %s5260_s4 = inlined_call_operand.vmem [shape: bf16[2,32,32], index: 4, kind: input, shape index: {}]   ;;  %s5261_s5 = inlined_call_operand.vmem [shape: f32[2,1,32], index: 5, kind: input, shape index: {}]   ;;  %s5262_s6 = inlined_call_operand.hbm [shape: bf16[2,32,32], index: 6, kind: input, shape index: {}]   ;;  %s5263_s7 = inlined_call_operand.vmem [shape: f32[2,1,32], index: 7, kind: input, shape index: {}]   ;;  %s5264_s8 = inlined_call_operand.hbm [shape: bf16[2,32,32], index: 8, kind: input, shape index: {}]   ;;  %s5265_s9 = inlined_call_operand.vmem [shape: f32[2,1,32], index: 9, kind: input, shape index: {}]   ;;  %s5266_s10 = inlined_call_operand.vmem [shape: f32[2,1,32], index: 10, kind: input, shape index: {}]   ;;  %s5267_s11 = inlined_call_operand.vmem [shape: f32[2,1,32], index: 11, kind: input, shape index: {}]   ;;  %s5268_s12 = inlined_call_operand.hbm [shape: bf16[2,32,64], index: 12, kind: input, shape index: {}]   ;;  %s5269_s13 = inlined_call_operand.vmem [shape: f32[2,1,64], index: 13, kind: input, shape index: {}]   ;;  %s5270_s14 = inlined_call_operand.vmem [shape: bf16[2,64,32], index: 14, kind: input, shape index: {}]   ;;  %s5271_s15 = inlined_call_operand.vmem [shape: f32[2,1,32], index: 15, kind: input, shape index: {}]   ;;  %s5272_s16 = inlined_call_operand.vmem [shape: f32[2,1,32], index: 16, kind: input, shape index: {}]   ;;  %s5273_s17 = inlined_call_operand.vmem [shape: f32[2,1,32], index: 17, kind: input, shape index: {}]   ;;  %s5274_s18 = inlined_call_operand.hbm [shape: f32[2,16,32], index: 18, kind: output, shape index: {0}]   ;;  %s5275_s19 = inlined_call_operand.hbm [shape: f32[2,4,16,16], index: 19, kind: output, shape index: {1}]  }
   0x1   :  { %5304 = sst [smem:[#allocation32_spill]] %s5256_s0 }
   0x2   :  { %5305 = sst [smem:[#allocation33_spill]] %s5257_s1 }
   0x3   :  { %5306 = sst [smem:[#allocation34_spill]] %s5258_s2 }
   0x4   :  { %5307 = sst [smem:[#allocation35_spill]] %s5259_s3 }
   0x5   :  { %5308 = sst [smem:[#allocation36_spill]] %s5260_s4 }
   0x6   :  { %5309 = sst [smem:[#allocation37_spill]] %s5262_s6 }
   0x7   :  { %5310 = sst [smem:[#allocation38_spill]] %s5264_s8 }
   0x8   :  { %5311 = sst [smem:[#allocation39_spill]] %s5265_s9 }
   0x9   :  { %5312 = sst [smem:[#allocation40_spill]] %s5266_s10 }
   0xa   :  { %5313 = sst [smem:[#allocation41_spill]] %s5267_s11 }
   0xb   :  { %5314 = sst [smem:[#allocation42_spill]] %s5268_s12 }
   0xc   :  { %5315 = sst [smem:[#allocation43_spill]] %s5269_s13 }
   0xd   :  { %5316 = sst [smem:[#allocation44_spill]] %s5270_s14 }
   0xe   :  { %5317 = sst [smem:[#allocation45_spill]] %s5271_s15 }
   0xf   :  { %5318 = sst [smem:[#allocation46_spill]] %s5272_s16 }
  0x10   :  { %5319 = sst [smem:[#allocation47_spill]] %s5273_s17 }
  0x11   :  { %5320 = sst [smem:[#allocation48_spill]] %s5274_s18 }
  0x12   :  { %5321 = sst [smem:[#allocation49_spill]] %s5275_s19 }
  0x13   :  { %25 = vsyncpa [#allocation3], 0 }
  0x14   :  { %27 = vsyncpa [#allocation3 + $0x1], 0 }
  0x15   :  { %28 = vsyncpa [#allocation6], 0 }
  0x16   :  { %30 = vsyncpa [#allocation6 + $0x1], 0 }
  0x17   :  { %31 = vsyncpa [#allocation4], 0 }
  0x18   :  { %33 = vsyncpa [#allocation4 + $0x1], 0 }
  0x19   :  { %34 = vsyncpa [#allocation10], 0 }
  0x1a   :  { %36 = vsyncpa [#allocation10 + $0x1], 0  ;;  %s4313_s0 = smov 0   ;;  %s4315_s30 = smov 0  }
  0x1b   :  { %s4317_s20 = smov 0   ;;  %s4319_s21 = smov 0  }
  0x1c   :  { %s4321_s1 = smov 0   ;;  %s4323_s22 = smov 0  }
  0x1d   :  { %s4325_s2 = smov 0   ;;  %s4327_s23 = smov 0  }
  0x1e   :  { %s4329_s24 = smov 0   ;;  %s4331_s25 = smov 0  }
  0x1f   :  { %s4333_s3 = smov 0  }
  0x20 LB: > { %5322 = sst [smem:[#allocation15_spill]] %s4153_s0  ;;  %s4367_s26 = sadd.s32 4294967295, %s4193_s3   ;;  %s4193_s3 = sphi %s4333_s3, %s42_s3   ;;  %s4189_s25 = sphi %s4331_s25, %s5408_s25   ;;  %s4185_s24 = sphi %s4329_s24, %s5407_s24   ;;  %s4181_s23 = sphi %s4327_s23, %s5406_s23   ;;  %s4177_s2 = sphi %s4325_s2, %s5405_s2   ;;  %s4173_s22 = sphi %s4323_s22, %s5404_s22   ;;  %s4169_s1 = sphi %s4321_s1, %s5403_s1   ;;  %s4165_s21 = sphi %s4319_s21, %s5402_s21   ;;  %s4161_s20 = sphi %s4317_s20, %s5401_s20   ;;  %s4157_s30 = sphi %s4315_s30, %s5400_s30   ;;  %s4153_s0 = sphi %s4313_s0, %s5399_s0  }
  0x21   : > { %5323 = sst [smem:[#allocation16_spill]] %s4157_s30  ;;  %s3508_s27 = sadd.s32 4294967294, %s4193_s3  }
  0x22   : > { %5324 = sst [smem:[#allocation17_spill]] %s4161_s20  ;;  %s51_s28 = sadd.s32 1, %s4185_s24 }
  0x23   : > { %5325 = sst [smem:[#allocation18_spill]] %s4169_s1  ;;  %s54_s29 = sadd.s32 1, %s4189_s25 }
  0x24   : > { %5326 = sst [smem:[#allocation19_spill]] %s4173_s22  ;;  %p52_p0 = scmp.ge.s32.totalorder %s51_s28, 2 }
  0x25   : > { %5327 = sst [smem:[#allocation20_spill]] %s4181_s23  ;;  %s217_s19 = sadd.s32 1, %s4173_s22 }
  0x26   : > { %5328 = sst [smem:[#allocation21_spill]] %s4185_s24  ;;  %p224_p1 = scmp.ne.s32.totalorder %s4173_s22, %s4169_s1 }
  0x27   : > { %5329 = sst [smem:[#allocation22_spill]] %s4189_s25  ;;  %p225_p2 = scmp.eq.s32.totalorder %s4193_s3, 0 }
  0x28   : > { %5330 = sst [smem:[#allocation23_spill]] %s4193_s3  ;;  %s5410_s28 = smov (%p52_p0, %s51_s28), 0 }
  0x29   : > { %5331 = sst [smem:[#allocation24_spill]] %s5410_s28  ;;  %s5412_s29 = smov (!%p52_p0, %s54_s29), %s4189_s25 }
  0x2a   : > { %s214_s18 = ssub.s32 %s4185_s24, %s5410_s28  ;;  %p4381_p3 = por %p225_p2, %p224_p1 }
  0x2b   : > { %p56_p4 = scmp.ge.s32.totalorder %s5412_s29, 2  ;;  %p215_p5 = scmp.eq.s32.totalorder %s214_s18, 0 }
  0x2c   : > { %p230_p6 = scmp.ne.s32.totalorder %s4169_s1, %s4165_s21  ;;  %p231_p7 = scmp.eq.s32.totalorder %s4367_s26, 0 }
  0x2d   : > { %s5414_s29 = smov (%p56_p4, %s5412_s29), 0  ;;  %s529_s14 = sadd.s32 1, %s4161_s20 }
  0x2e   : > { %5333 = sst [smem:[#allocation25_spill]] %s5414_s29  ;;  %p4392_p8 = por %p231_p7, %p230_p6 }
  0x2f   : > { %s4390_s16 = scalar_select %p215_p5, %s4173_s22, %s217_s19  }
  0x30   : > { %s5335_s28 = scalar_select %p4392_p8, 1, 0 }
  0x31   : > { %5334 = sst [smem:[#allocation26_spill]] %s4390_s16  ;;  %s526_s15 = ssub.s32 %s4189_s25, %s5414_s29 }
  0x32   : > { %p527_p9 = scmp.eq.s32.totalorder %s526_s15, 0  ;;  %p539_p10 = scmp.ne.s32.totalorder %s4161_s20, %s4157_s30 }
  0x33   : > { %p540_p11 = scmp.eq.s32.totalorder %s4367_s26, 3  ;;  %p545_p13 = scmp.ne.s32.totalorder %s4157_s30, %s4153_s0 }
  0x34   : > { %s4403_s18 = scalar_select %p527_p9, %s4161_s20, %s529_s14  }
  0x35   : > { %p4405_p12 = por %p540_p11, %p539_p10  ;;  %p546_p0 = scmp.eq.s32.totalorder %s3508_s27, 3 }
  0x36   : > { %5336 = sst [smem:[#allocation27_spill]] %s4403_s18  ;;  %p3771_p1 = scmp.lt.s32.totalorder %s4193_s3, 4 }
  0x37   : > { %s5337_s21 = scalar_select %p4405_p12, 1, 0 }
  0x38   : > { %s5282_s19 = sand.u32 1, %s4173_s22   ;;  %p4413_p2 = por %p546_p0, %p545_p13 }
  0x39   : > { %5338 = sst [smem:[#allocation28_spill]] %s5337_s21  ;;  %s4419_s15 = sshll.u32 %s5282_s19, 4 }
  0x3a   : > { %s5339_s16 = scalar_select %p4413_p2, 1, 0 }
  0x3b   : > { %s4422_s29 = sshll.u32 %s4185_s24, 8  ;;  %p4426_p4 = pnand %p3771_p1, %p4381_p3 }
  0x3c   : > { %5340 = sst [smem:[#allocation29_spill]] %s5339_s16  ;;  %s661_s27 = sand.u32 1, %s4193_s3  }
  0x3d   : > { %s5342_s8 = sld [smem:[#allocation38_spill]]  ;;  %s665_s19 = scalar_lea.vmem [#allocation5], %s4419_s15 }
  0x3e   : > { %s672_s24 = sshll.u32 %s665_s19, 4  ;;  %s4441_s17 = scalar_lea.sflag [#allocation6], %s661_s27  ;;  %s4438_s24 = int_to_ptr.vmem [resolvable:$true] %s672_s24 }
  0x3f   : > { %p4447_p6 = pneg %p4426_p4 }
  0x43   : > { %s4435_s20 = scalar_lea.hbm %s5342_s8, %s4422_s29  ;;  %s3950_s19 = scalar_lea.hbm %s5342_s8, 512 }
  0x44   : > { %s3945_s16 = scalar_lea.hbm %s4435_s20, 256  ;;  %p3951_p10 = scmp.lt.u32.totalorder %s4435_s20, %s5342_s8 }
  0x45   : > { %p3946_p3 = scmp.ne.s32.totalorder %s4435_s20, %s3945_s16  ;;  %p3952_p11 = scmp.lt.u32.totalorder %s3950_s19, %s3945_s16 }
  0x46   : > { %p3954_p0 = scmp.lt.u32.totalorder %s3945_s16, %s4435_s20 }
  0x47   : > { %p3948_p7 = pnand %p4447_p6, %p3946_p3  ;;  %p3953_p13 = por %p3952_p11, %p3951_p10 }
  0x49   : > { %p3949_p9 = pneg %p3948_p7  ;;  %p3955_p1 = por %p3954_p0, %p3953_p13 }
  0x4b   : > { %p3956_p5 = pnand %p3955_p1, %p3949_p9 }
  0x4d   : > { %3959 = shalt.err (!%p3956_p5)
}
  0x4e   : > { %s3960_s27 = scalar_lea.vmem %s4438_s24, 256  ;;  %s4195_s25 = smov [#allocation5]  }
  0x4f   : > { %p3961_p3 = scmp.ne.s32.totalorder %s4438_s24, %s3960_s27  ;;  %s3965_s18 = sshll.u32 %s4195_s25, 4  ;;  %s3966_s18 = int_to_ptr.vmem [resolvable:$false] %s3965_s18 }
  0x50   : > { %s3967_s13 = scalar_lea.vmem %s3966_s18, 512  ;;  %p3968_p12 = scmp.lt.s32.totalorder %s4438_s24, %s3966_s18 }
  0x51   : > { %p3963_p7 = pnand %p3961_p3, %p4447_p6  ;;  %p3969_p8 = scmp.lt.s32.totalorder %s3967_s13, %s3960_s27 }
  0x53   : > { %p3964_p2 = pneg %p3963_p7  ;;  %p3970_p10 = por %p3969_p8, %p3968_p12 }
  0x55   : > { %p3971_p11 = pnand %p3970_p10, %p3964_p2 }
  0x57   : > { %3974 = shalt.err (!%p3971_p11)
}
  0x58   : > { %s5290_s16 = smov 64   ;;  %s5292_s21 = smov 4  }
  0x59   : > { %3760 = dma.hbm_to_vmem [thread:$0]  (!%p4426_p4), %s4435_s20, 256, %s4438_s24, %s4441_s17, %s5290_s16, %s5290_s16, %s5292_s21  }
  0x5a   : > { %p751_p8 = scmp.lt.s32.totalorder %s4193_s3, 5  ;;  %p5344_p12 = scmp.ge.s32.totalorder %s4193_s3, 1 }
  0x5b   : > { %s5346_s6 = sld [smem:[#allocation37_spill]]  ;;  %s638_s13 = scalar_lea.vmem [#allocation2], %s4419_s15 }
  0x5c   : > { %p4477_p2 = pnand %p5344_p12, %p751_p8  ;;  %s645_s8 = sshll.u32 %s638_s13, 4  ;;  %s4488_s8 = int_to_ptr.vmem [resolvable:$true] %s645_s8 }
  0x5d   : > { %s5347_s20 = sand.u32 1, %s4173_s22  }
  0x5e   : > { %s5345_s19 = scalar_select %p4477_p2, 1, 0 }
  0x5f   : > { %s4492_s24 = scalar_lea.sflag [#allocation3], %s5347_s20 }
  0x61   : > { %s4485_s18 = scalar_lea.hbm %s5346_s6, %s4422_s29  ;;  %s3980_s25 = scalar_lea.hbm %s5346_s6, 512 }
  0x62   : > { %s3975_s16 = scalar_lea.hbm %s4485_s18, 256  ;;  %p3981_p0 = scmp.lt.u32.totalorder %s4485_s18, %s5346_s6 }
  0x63   : > { %p3976_p5 = scmp.ne.s32.totalorder %s4485_s18, %s3975_s16  ;;  %p3982_p1 = scmp.lt.u32.totalorder %s3980_s25, %s3975_s16 }
  0x64   : > { %p3984_p7 = scmp.lt.u32.totalorder %s3975_s16, %s4485_s18 }
  0x65   : > { %p3978_p9 = pnand %p3976_p5, %p4447_p6  ;;  %p3983_p3 = por %p3982_p1, %p3981_p0 }
  0x67   : > { %p3979_p13 = pneg %p3978_p9  ;;  %p3985_p10 = por %p3984_p7, %p3983_p3 }
  0x69   : > { %p3986_p11 = pnand %p3985_p10, %p3979_p13 }
  0x6b   : > { %3989 = shalt.err (!%p3986_p11)
}
  0x6c   : > { %s3990_s13 = scalar_lea.vmem %s4488_s8, 256  ;;  %s4198_s21 = smov [#allocation2]  }
  0x6d   : > { %p3991_p8 = scmp.ne.s32.totalorder %s4488_s8, %s3990_s13  ;;  %s3995_s20 = sshll.u32 %s4198_s21, 4  ;;  %s3996_s20 = int_to_ptr.vmem [resolvable:$false] %s3995_s20 }
  0x6e   : > { %s3997_s11 = scalar_lea.vmem %s3996_s20, 512  ;;  %p3998_p9 = scmp.lt.s32.totalorder %s4488_s8, %s3996_s20 }
  0x6f   : > { %p3993_p12 = pnand %p3991_p8, %p4447_p6  ;;  %p3999_p2 = scmp.lt.s32.totalorder %s3997_s11, %s3990_s13 }
  0x71   : > { %p3994_p5 = pneg %p3993_p12  ;;  %p4000_p0 = por %p3999_p2, %p3998_p9 }
  0x73   : > { %p4001_p1 = pnand %p4000_p0, %p3994_p5 }
  0x75   : > { %4004 = shalt.err (!%p4001_p1)
}
  0x76   : > { %s5348_s3 = smov 4   ;;  %s5349_s16 = smov 64  }
  0x77   : > { %3757 = dma.hbm_to_vmem [thread:$0]  (!%p4426_p4), %s4485_s18, 256, %s4488_s8, %s4492_s24, %s5349_s16, %s5349_s16, %s5348_s3  }
  0x78   : > { %s5350_s12 = sld [smem:[#allocation42_spill]]  ;;  %s704_s13 = scalar_lea.vmem [#allocation7], %s4419_s15 }
  0x79   : > { %s711_s20 = sshll.u32 %s704_s13, 4  ;;  %s4526_s20 = int_to_ptr.vmem [resolvable:$true] %s711_s20 }
  0x7e   : > { %s4523_s21 = scalar_lea.hbm %s5350_s12, %s4422_s29  ;;  %s4010_s18 = scalar_lea.hbm %s5350_s12, 512 }
  0x7f   : > { %s4005_s11 = scalar_lea.hbm %s4523_s21, 256  ;;  %p4011_p7 = scmp.lt.u32.totalorder %s4523_s21, %s5350_s12 }
  0x80   : > { %p4006_p2 = scmp.ne.s32.totalorder %s4523_s21, %s4005_s11  ;;  %p4012_p10 = scmp.lt.u32.totalorder %s4010_s18, %s4005_s11 }
  0x81   : > { %p4014_p8 = scmp.lt.u32.totalorder %s4005_s11, %s4523_s21 }
  0x82   : > { %p4008_p13 = pnand %p4006_p2, %p4447_p6  ;;  %p4013_p11 = por %p4012_p10, %p4011_p7 }
  0x84   : > { %p4009_p3 = pneg %p4008_p13  ;;  %p4015_p12 = por %p4014_p8, %p4013_p11 }
  0x86   : > { %p4016_p5 = pnand %p4015_p12, %p4009_p3 }
  0x88   : > { %4019 = shalt.err (!%p4016_p5)
}
  0x89   : > { %s4020_s15 = scalar_lea.vmem %s4526_s20, 256  ;;  %s4199_s6 = smov [#allocation7]  }
  0x8a   : > { %p4021_p9 = scmp.ne.s32.totalorder %s4526_s20, %s4020_s15  ;;  %s4025_s27 = sshll.u32 %s4199_s6, 4  ;;  %s4026_s27 = int_to_ptr.vmem [resolvable:$false] %s4025_s27 }
  0x8b   : > { %s4027_s25 = scalar_lea.vmem %s4026_s27, 512  ;;  %p4028_p2 = scmp.lt.s32.totalorder %s4526_s20, %s4026_s27 }
  0x8c   : > { %p4023_p0 = pnand %p4021_p9, %p4447_p6  ;;  %p4029_p13 = scmp.lt.s32.totalorder %s4027_s25, %s4020_s15 }
  0x8e   : > { %p4024_p1 = pneg %p4023_p0  ;;  %p4030_p7 = por %p4029_p13, %p4028_p2 }
  0x90   : > { %p4031_p10 = pnand %p4030_p7, %p4024_p1 }
  0x92   : > { %4034 = shalt.err (!%p4031_p10)
}
  0x93   : > { %3763 = dma.hbm_to_vmem [thread:$0]  (!%p4426_p4), %s4523_s21, 256, %s4526_s20, %s4441_s17, %s5349_s16, %s5349_s16, %s5348_s3  }
  0x94   : > { %p5351_p6 = scmp.ne.s32.totalorder %s5345_s19, 0 }
  0x96   : > { %755 = sbr.rel (%p5351_p6) target bundleno = 2860 (0xb2c), region = 92 }
  0x9d   : > { %s757_s0 = sand.u32 1, %s4169_s1   ;;  %p5352_p3 = scmp.ne.s32.totalorder %s5335_s28, 0 }
  0x9e   : > { %s4556_s13 = sshll.u32 %s757_s0, 4  ;;  %s758_s11 = scalar_lea.sflag [#allocation3], %s757_s0 }
  0x9f   : > { %4136 = dma.done.wait (%p5352_p3), %s758_s11, 256  }
  0xa0   : > { %4138 = vsyncadd (%p5352_p3), %s758_s11, 4294967040  ;;  %s766_s14 = sand.u32 1, %s4367_s26  }
  0xa1   : > { %s767_s17 = scalar_lea.sflag [#allocation6], %s766_s14 }
  0xa2   : > { %4140 = dma.done.wait (%p5352_p3), %s767_s17, 512  }
  0xa3   : > { %4142 = vsyncadd (%p5352_p3), %s767_s17, 4294966784  ;;  %s4570_s3 = sand.u32 1, %s4157_s30   ;;  %p902_p4 = scmp.lt.s32.totalorder %s4181_s23, 1 }
  0xa4   : > { %5353 = sst [smem:[#allocation30_spill]] %s4570_s3  ;;  %s3524_s16 = sshll.u32 %s4570_s3, 4 }
  0xa5   : > { %s3525_s21 = sshll.u32 %s4570_s3, 6  ;;  %p910_p11 = scmp.lt.s32.totalorder %s4177_s2, 1 }
  0xa6   : > { %s4577_s26 = scalar_select %p902_p4, %s4181_s23, 1 }
  0xa7   : > { %s4580_s20 = scalar_select %p910_p11, %s4177_s2, 1 }
  0xa8   : > { %5354 = sst [smem:[#allocation31_spill]] %s4577_s26  ;;  %s3602_s28 = sshll.u32 %s4577_s26, 4 }
  0xa9   : > { %s5356_s25 = sld [smem:[#allocation32_spill]]  ;;  %s3603_s11 = sshll.u32 %s4580_s20, 4 }
  0xaa   : > { %s5357_s19 = sld [smem:[#allocation34_spill]]  ;;  %s5359_s4 = sld [smem:[#allocation36_spill]] }
  0xab   : > { %s5363_s15 = sld [smem:[#allocation43_spill]]  ;;  %s3605_s6 = sshll.u32 %s4580_s20, 5 }
  0xac   : > { %s5364_s27 = sld [smem:[#allocation44_spill]]  ;;  %s5366_s12 = sld [smem:[#allocation46_spill]] }
  0xad   : > { %s5367_s3 = sld [smem:[#allocation47_spill]]  ;;  %s779_s30 = scalar_lea.vmem [#allocation7], %s4556_s13 }
  0xae   : > { %s4646_s18 = scalar_lea.vmem [#allocation8], %s3524_s16  ;;  %p3534_p8 = scmp.ne.s32.totalorder %s4177_s2, 0 }
  0xaf   : > { %s906_s0 = scalar_lea.vmem %s5356_s25, %s3602_s28  ;;  %vm962_vm0 = vcmask (!%p3534_p8), 261120  }
  0xb0   : > { %s4594_s8 = scalar_lea.vmem %s5357_s19, %s3603_s11  ;;  %s922_s24 = scalar_lea.vmem %s5359_s4, %s3603_s11  ;;  %v960_v0 = vld [vmem:[%s906_s0] sm:$0xff] (!%p3534_p8)  ;;  %v961_v1 = vld [vmem:[%s906_s0 + $0x8] sm:$0xff] (!%p3534_p8) }
  0xb1   : > { %s940_s29 = scalar_lea.vmem %s5363_s15, %s4580_s20  ;;  %s5365_s19 = sld [smem:[#allocation45_spill]]  ;;  %963 = vst.msk [vmem:[%s4646_s18] sm:$0xff] (!%p3534_p8), %vm962_vm0, %v960_v0  ;;  %964 = vst.msk [vmem:[%s4646_s18 + $0x8] sm:$0xff] (!%p3534_p8), %vm962_vm0, %v961_v1 }
  0xb2   : > { %s4631_s25 = scalar_lea.vmem %s5364_s27, %s3605_s6  ;;  %s951_s10 = scalar_lea.vmem %s5366_s12, %s4580_s20 }
  0xb3   : > { %s954_s11 = scalar_lea.vmem %s5367_s3, %s4580_s20  ;;  %s4648_s15 = scalar_lea.vmem [#allocation9], %s3525_s21 }
  0xb4   : > { %959 = sbr.rel (%p3534_p8) target bundleno = 187 (0xbb), region = 108 }
  0xb7   : > { %s948_s9 = scalar_lea.vmem %s5365_s19, %s4580_s20 }
  0xbb PF: > { %v3889_v2 = vld [vmem:[%s922_s24] sm:$0xff]   ;;  %v4200_v3 = vmov 0.0   ;;  %v3890_v4 = vld [vmem:[%s922_s24 + $0x8] sm:$0xff]   ;;  %vm4201_vm1 = vmmov 0   ;;  %vm991_vm2 = vcmask 261120   ;;  %s5368_s16 = scalar_lea.vmem %s5261_s5, %s4580_s20  ;;  %s4202_s21 = smov 112   ;;  %v1189_v28 = vlaneseq }
  0xbc   : > { %3652 = vmatprep.subr.bf16.mxu1 %v4200_v3  ;;  %3644 = vmatprep.subr.bf16.mxu0 %v4200_v3  ;;  %v3891_v5 = vld [vmem:[%s4594_s8] sm:$0xff]   ;;  %v966_v7 = vld [vmem:[%s4646_s18 + $0x8] sm:$0xff]  ;;  %s4203_s0 = smov 120   ;;  %s5369_s19 = sld [smem:[#allocation35_spill]]  ;;  %v4205_v26 = vmov 1983009808  }
  0xbd   : > { %3653 = vmatpush3.bf16.msra.mxu1 %v3889_v2  ;;  %3656 = vmatprep.mubr.msk.bf16.mxu1 %vm4201_vm1, %v4200_v3  ;;  %v965_v6 = vld [vmem:[%s4646_s18] sm:$0xff]  ;;  %v3892_v8 = vld [vmem:[%s4594_s8 + $0x8] sm:$0xff]   ;;  %s4204_s28 = smov 104   ;;  %s5371_s27 = scalar_lea.vmem [#allocation2], %s4556_s13  ;;  %v1187_v27 = vunpack.c.l.s4 %v4205_v26  ;;  %v4206_v29 = vmov 1934713408  }
  0xbe   : > { %3654 = vmatprep.subr.bf16.mxu1 %v4200_v3  ;;  %3648 = vmatprep.mubr.msk.bf16.mxu0 %vm4201_vm1, %v4200_v3  ;;  %v967_v9 = vpack.c.bf16 %v966_v7, %v965_v6  ;;  %v3539_v10 = vld [vmem:[%s5368_s16] ss:$0 sm:$0xff]  ;;  %s5372_s23 = smov %s5371_s27  ;;  %v1219_v30 = vunpack.c.l.s4 %v4206_v29  ;;  %v1190_v32 = vshrl.u32 %v1189_v28, 7  ;;  %vm2053_vm3 = vcmask 64512   ;;  %s5373_s14 = sld [smem:[#allocation31_spill]] }
  0xbf   : > { %3645 = vmatpush3.bf16.msra.mxu0 %v3891_v5  ;;  %v3893_v23 = vld [vmem:[%s5371_s27] sm:$0xff]   ;;  %v3894_v25 = vld [vmem:[%s5372_s23 + $0x8] sm:$0xff]   ;;  %v1188_v31 = vunpack.c.0.s8 %v1187_v27  ;;  %s5374_s1 = sld [smem:[#allocation33_spill]]  ;;  %vm2264_vm4 = vcmask 130048   ;;  %s5376_s8 = scalar_lea.vmem %s5263_s7, %s4580_s20  ;;  %vm2833_vm5 = vcmask 195584   ;;  %vm3061_vm6 = vcmask 523264  }
  0xc0   : > { %3646 = vmatprep.subr.bf16.mxu0 %v4200_v3  ;;  %v1220_v35 = vunpack.c.0.s8 %v1219_v30  ;;  %s5377_s16 = scalar_lea.vmem [#allocation5], %s4556_s13  ;;  %s4208_s24 = smov 8  }
  0xc1   : > { %3655 = vmatpush3.bf16.msra.mxu1 %v3890_v4  ;;  %v4719_v36 = vsub.s32 %v1188_v31, %v1190_v32  ;;  %s4209_s6 = smov 24   ;;  %s5381_s23 = sld [smem:[#allocation40_spill]] }
  0xc2   : > { %3668 = vmatprep.subr.bf16.mxu1 %v4200_v3  ;;  %s5370_s12 = scalar_lea.vmem %s5369_s19, %s4580_s20  ;;  %v4721_v43 = vsub.s32 %v1220_v35, %v1190_v32  ;;  %p3590_p12 = scmp.ne.s32.totalorder %s4177_s2, 1 }
  0xc3   : > { %3647 = vmatpush3.bf16.msra.mxu0 %v3892_v8  ;;  %v3535_v18 = vld [vmem:[%s5370_s12] ss:$0 sm:$0xff] }
  0xc4   : > { %3657 = vmatmul.mubr.msk.bf16.vlgmr.msra.gmra.mrb[0].mxu1 %vm991_vm2, %v967_v9  ;;  %3660 = vmatprep.subr.bf16.mxu0 %v4200_v3 }
  0xc5   : > { %3670 = vmatprep.mubr.msk.bf16.mxu1 %vm4201_vm1, %v4200_v3  ;;  %s5375_s22 = scalar_lea.vmem %s5374_s1, %s5373_s14  ;;  %s5383_s1 = sld [smem:[#allocation41_spill]] }
  0xc6   : > { %3649 = vmatmul.mubr.msk.bf16.vlgmr.msra.gmra.mrb[0].mxu0 %vm991_vm2, %v967_v9 }
  0xc7   : > { %3664 = vmatprep.mubr.msk.bf16.mxu0 %vm4201_vm1, %v4200_v3  ;;  %3661 = vmatpush3.bf16.msra.mxu0 %v3893_v23  ;;  %s5382_s14 = scalar_lea.vmem %s5381_s23, %s4580_s20 }
  0xc8   : > { %3662 = vmatprep.subr.bf16.mxu0 %v4200_v3 }
  0xcb   : > { %3663 = vmatpush3.bf16.msra.mxu0 %v3894_v25 }
  0xcc   : > { %3674 = vmatprep.subr.bf16.mxu0 %v4200_v3 }
  0xce   : > { %3665 = vmatmul.mubr.msk.bf16.vlgmr.msra.gmra.mrb[4].mxu0 %vm991_vm2, %v967_v9 }
  0xcf   : > { %3676 = vmatprep.mubr.msk.bf16.mxu0 %vm4201_vm1, %v4200_v3 }
 0x197   : > { %v1093_v11 = vpop.f32.mrb[0].mxu1 }
 0x198   : > { %v1094_v12 = vadd.f32 %v3539_v10, %v1093_v11  ;;  %v3658_v13 = vpop.f32.mrb[1].mxu1 }
 0x199   : > { %v1096_v14 = vpop.f32.mrb[2].mxu1  ;;  %v1029_v15 = vpop.f32.mrb[0].mxu0 }
 0x19a   : > { %1468 = vrot.lane.b32.xlu1 %v1094_v12, %s4202_s21  ;;  %1462 = vrot.lane.b32.xlu0 %v1094_v12, %s4203_s0  ;;  %v3659_v16 = vpop.f32.mrb[3].mxu1  ;;  %v3650_v17 = vpop.f32.mrb[1].mxu0  ;;  %v4685_v20 = vadd.f32 %v3539_v10, %v1096_v14  ;;  %v4687_v22 = vadd.f32 %v3535_v18, %v1029_v15 }
 0x19b   : > { %v1032_v19 = vpop.f32.mrb[2].mxu0 }
 0x19c   : > { %v3651_v21 = vpop.f32.mrb[3].mxu0  ;;  %v4698_v24 = vadd.f32 %v3535_v18, %v1032_v19 }
 0x19e   : > { %1474 = vrot.lane.b32.xlu0 %v1094_v12, %s4204_s28  ;;  %1470 = vrot.lane.b32.xlu1 %v4685_v20, %s4202_s21 }
 0x1a2   : > { %1476 = vrot.lane.b32.xlu1 %v4685_v20, %s4204_s28  ;;  %1166 = vrot.lane.b32.xlu0 %v4687_v22, %s4203_s0 }
 0x1a6   : > { %1464 = vrot.lane.b32.xlu0 %v4685_v20, %s4203_s0  ;;  %1168 = vrot.lane.b32.xlu1 %v4698_v24, %s4203_s0 }
 0x1aa   : > { %1172 = vrot.lane.b32.xlu0 %v4687_v22, %s4202_s21  ;;  %1174 = vrot.lane.b32.xlu1 %v4698_v24, %s4202_s21 }
 0x1ae   : > { %1178 = vrot.lane.b32.xlu0 %v4687_v22, %s4204_s28  ;;  %1180 = vrot.lane.b32.xlu1 %v4698_v24, %s4204_s28 }
 0x20c   : > { %v1469_v33 = vpop.permute.xlu1 %1468  ;;  %v1463_v34 = vpop.permute.xlu0 %1462 }
 0x20d   : > { %v1480_v37 = vcombine.low %v1094_v12, %v1469_v33  ;;  %v1481_v38 = vcombine.high %v1094_v12, %v1469_v33 }
 0x20f   : > { %v1488_v44 = vrot.slane %v1480_v37, %v4719_v36  ;;  %v1495_v45 = vrot.slane %v1481_v38, %v4719_v36 }
 0x210   : > { %v1475_v39 = vpop.permute.xlu0 %1474  ;;  %v1471_v40 = vpop.permute.xlu1 %1470 }
 0x211   : > { %v1496_v41 = vcombine.low %v1463_v34, %v1475_v39  ;;  %v1497_v42 = vcombine.high %v1463_v34, %v1475_v39  ;;  %v1548_v58 = vcombine.low %v4685_v20, %v1471_v40  ;;  %v1549_v59 = vcombine.high %v4685_v20, %v1471_v40 }
 0x213   : > { %v1504_v46 = vrot.slane %v1496_v41, %v4719_v36  ;;  %v1511_v47 = vrot.slane %v1497_v42, %v4719_v36  ;;  %v1556_v5 = vrot.slane %v1548_v58, %v4719_v36  ;;  %v1563_v6 = vrot.slane %v1549_v59, %v4719_v36 }
 0x214   : > { %v1477_v48 = vpop.permute.xlu1 %1476  ;;  %v1167_v49 = vpop.permute.xlu0 %1166 }
 0x215   : > { %v1512_v50 = vcombine.low %v1488_v44, %v1504_v46  ;;  %v1513_v51 = vcombine.high %v1488_v44, %v1504_v46  ;;  %v1528_v52 = vcombine.low %v1495_v45, %v1511_v47  ;;  %v1529_v53 = vcombine.high %v1495_v45, %v1511_v47 }
 0x217   : > { %v1520_v54 = vrot.slane %v1512_v50, %v4721_v43  ;;  %v1527_v55 = vrot.slane %v1513_v51, %v4721_v43  ;;  %v1536_v56 = vrot.slane %v1528_v52, %v4721_v43  ;;  %v1543_v57 = vrot.slane %v1529_v53, %v4721_v43 }
 0x218   : > { %v1465_v60 = vpop.permute.xlu0 %1464  ;;  %v1169_v61 = vpop.permute.xlu1 %1168 }
 0x219   : > { %v1564_v62 = vcombine.low %v1465_v60, %v1477_v48  ;;  %v1565_v63 = vcombine.high %v1465_v60, %v1477_v48  ;;  %v1616_v0 = vcombine.low %v1520_v54, %v1527_v55  ;;  %v3551_v1 = vcombine.high %v1520_v54, %v1527_v55 }
 0x21a   : > { %v1632_v2 = vcombine.low %v1536_v56, %v1543_v57  ;;  %v3552_v4 = vcombine.high %v1536_v56, %v1543_v57 }
 0x21b   : > { %v1572_v7 = vrot.slane %v1564_v62, %v4719_v36  ;;  %v1579_v8 = vrot.slane %v1565_v63, %v4719_v36  ;;  %v4742_v19 = vrot.slane %v1616_v0, %v4719_v36  ;;  %v4745_v20 = vrot.slane %v3551_v1, %v4719_v36 }
 0x21c   : > { %v1173_v9 = vpop.permute.xlu0 %1172  ;;  %v1175_v10 = vpop.permute.xlu1 %1174  ;;  %v4748_v21 = vrot.slane %v1632_v2, %v4719_v36  ;;  %v4751_v23 = vrot.slane %v3552_v4, %v4719_v36 }
 0x21d   : > { %v1184_v11 = vcombine.low %v4687_v22, %v1173_v9  ;;  %v1185_v12 = vcombine.high %v4687_v22, %v1173_v9  ;;  %v1252_v13 = vcombine.low %v4698_v24, %v1175_v10  ;;  %v1253_v14 = vcombine.high %v4698_v24, %v1175_v10 }
 0x21e   : > { %v1580_v15 = vcombine.low %v1556_v5, %v1572_v7  ;;  %v1581_v16 = vcombine.high %v1556_v5, %v1572_v7  ;;  %v1596_v17 = vcombine.low %v1563_v6, %v1579_v8  ;;  %v1597_v18 = vcombine.high %v1563_v6, %v1579_v8 }
 0x21f   : > { %v1192_v33 = vrot.slane %v1184_v11, %v4719_v36  ;;  %v1199_v34 = vrot.slane %v1185_v12, %v4719_v36  ;;  %v1260_v35 = vrot.slane %v1252_v13, %v4719_v36  ;;  %v1267_v37 = vrot.slane %v1253_v14, %v4719_v36 }
 0x220   : > { %v1588_v22 = vrot.slane %v1580_v15, %v4721_v43  ;;  %v1595_v24 = vrot.slane %v1581_v16, %v4721_v43  ;;  %v1604_v25 = vrot.slane %v1596_v17, %v4721_v43  ;;  %v1611_v26 = vrot.slane %v1597_v18, %v4721_v43  ;;  %v1179_v27 = vpop.permute.xlu0 %1178  ;;  %v1181_v28 = vpop.permute.xlu1 %1180 }
 0x221   : > { %v1200_v29 = vcombine.low %v1167_v49, %v1179_v27  ;;  %v1201_v30 = vcombine.high %v1167_v49, %v1179_v27  ;;  %v1268_v31 = vcombine.low %v1169_v61, %v1181_v28  ;;  %v1269_v32 = vcombine.high %v1169_v61, %v1181_v28 }
 0x222   : > { %v1684_v42 = vcombine.low %v1588_v22, %v1595_v24  ;;  %v3553_v44 = vcombine.high %v1588_v22, %v1595_v24  ;;  %v1700_v45 = vcombine.low %v1604_v25, %v1611_v26  ;;  %v3554_v46 = vcombine.high %v1604_v25, %v1611_v26 }
 0x223   : > { %v1208_v38 = vrot.slane %v1200_v29, %v4719_v36  ;;  %v1215_v39 = vrot.slane %v1201_v30, %v4719_v36  ;;  %v1276_v40 = vrot.slane %v1268_v31, %v4719_v36  ;;  %v1283_v41 = vrot.slane %v1269_v32, %v4719_v36 }
 0x224   : > { %v1691_v16 = vrot.slane %v1684_v42, %v4719_v36  ;;  %v1699_v17 = vrot.slane %v3553_v44, %v4719_v36  ;;  %v1707_v18 = vrot.slane %v1700_v45, %v4719_v36  ;;  %v1715_v22 = vrot.slane %v3554_v46, %v4719_v36 }
 0x225   : > { %v1216_v47 = vcombine.low %v1192_v33, %v1208_v38  ;;  %v1217_v48 = vcombine.high %v1192_v33, %v1208_v38  ;;  %v1232_v49 = vcombine.low %v1199_v34, %v1215_v39  ;;  %v1233_v50 = vcombine.high %v1199_v34, %v1215_v39 }
 0x226   : > { %v1284_v51 = vcombine.low %v1260_v35, %v1276_v40  ;;  %v1285_v52 = vcombine.high %v1260_v35, %v1276_v40  ;;  %v1300_v53 = vcombine.low %v1267_v37, %v1283_v41  ;;  %v1301_v54 = vcombine.high %v1267_v37, %v1283_v41 }
 0x227   : > { %v1224_v55 = vrot.slane %v1216_v47, %v4721_v43  ;;  %v1231_v56 = vrot.slane %v1217_v48, %v4721_v43  ;;  %v1240_v57 = vrot.slane %v1232_v49, %v4721_v43  ;;  %v1247_v58 = vrot.slane %v1233_v50, %v4721_v43 }
 0x228   : > { %v1292_v59 = vrot.slane %v1284_v51, %v4721_v43  ;;  %v1299_v60 = vrot.slane %v1285_v52, %v4721_v43  ;;  %v1308_v61 = vrot.slane %v1300_v53, %v4721_v43  ;;  %v1315_v62 = vrot.slane %v1301_v54, %v4721_v43 }
 0x229   : > { %v1320_v63 = vcombine.low %v1224_v55, %v1231_v56  ;;  %v3547_v0 = vcombine.high %v1224_v55, %v1231_v56  ;;  %v1336_v1 = vcombine.low %v1240_v57, %v1247_v58  ;;  %v3548_v2 = vcombine.high %v1240_v57, %v1247_v58 }
 0x22a   : > { %v1388_v4 = vcombine.low %v1292_v59, %v1299_v60  ;;  %v3549_v5 = vcombine.high %v1292_v59, %v1299_v60  ;;  %v1404_v6 = vcombine.low %v1308_v61, %v1315_v62  ;;  %v3550_v7 = vcombine.high %v1308_v61, %v1315_v62 }
 0x22b   : > { %v4774_v8 = vrot.slane %v1320_v63, %v4719_v36  ;;  %v4777_v9 = vrot.slane %v3547_v0, %v4719_v36  ;;  %v4780_v10 = vrot.slane %v1336_v1, %v4719_v36  ;;  %v4783_v11 = vrot.slane %v3548_v2, %v4719_v36 }
 0x22c   : > { %v4786_v12 = vrot.slane %v1388_v4, %v4719_v36  ;;  %v4789_v13 = vrot.slane %v3549_v5, %v4719_v36  ;;  %v4792_v14 = vrot.slane %v1404_v6, %v4719_v36  ;;  %v1419_v15 = vrot.slane %v3550_v7, %v4719_v36 }
 0x22d   : > { %v1352_v24 = vcombine.low %v4774_v8, %v4777_v9  ;;  %v1368_v25 = vcombine.low %v4780_v10, %v4783_v11  ;;  %v1648_v28 = vcombine.low %v4742_v19, %v4745_v20  ;;  %v1664_v29 = vcombine.low %v4748_v21, %v4751_v23 }
 0x22e   : > { %v1420_v26 = vcombine.low %v4786_v12, %v4789_v13  ;;  %v1436_v27 = vcombine.low %v4792_v14, %v1419_v15  ;;  %v1716_v30 = vcombine.low %v1691_v16, %v1699_v17  ;;  %v1732_v31 = vcombine.low %v1707_v18, %v1715_v22 }
 0x22f   : > { %v1360_v32 = vrot.slane %v1352_v24, %v4721_v43  ;;  %v1376_v33 = vrot.slane %v1368_v25, %v4721_v43  ;;  %v1656_v34 = vrot.slane %v1648_v28, %v4721_v43  ;;  %v1672_v35 = vrot.slane %v1664_v29, %v4721_v43  ;;  %v3563_v29 = vld [vmem:[%s5375_s22] ss:$0 sm:$0xff]  ;;  %s5384_s22 = scalar_lea.vmem %s5383_s1, %s4580_s20 }
 0x230   : > { %v1724_v37 = vrot.slane %v1716_v30, %v4721_v43  ;;  %v1740_v38 = vrot.slane %v1732_v31, %v4721_v43  ;;  %v1428_v39 = vrot.slane %v1420_v26, %v4721_v43  ;;  %v1444_v40 = vrot.slane %v1436_v27, %v4721_v43 }
 0x231   : > { %v1649_v41 = vcombine.high %v4742_v19, %v4745_v20  ;;  %v1665_v42 = vcombine.high %v4748_v21, %v4751_v23  ;;  %v1680_v44 = vcombine.low %v1656_v34, %v1672_v35  ;;  %v1681_v46 = vcombine.high %v1656_v34, %v1672_v35 }
 0x232   : > { %v1748_v45 = vcombine.low %v1724_v37, %v1740_v38  ;;  %v1749_v47 = vcombine.high %v1724_v37, %v1740_v38  ;;  %v1353_v48 = vcombine.high %v4774_v8, %v4777_v9  ;;  %v1369_v49 = vcombine.high %v4780_v10, %v4783_v11 }
 0x233   : > { %v1717_v50 = vcombine.high %v1691_v16, %v1699_v17  ;;  %v1733_v51 = vcombine.high %v1707_v18, %v1715_v22  ;;  %v1663_v54 = vrot.slane %v1649_v41, %v4721_v43  ;;  %v1679_v19 = vrot.slane %v1665_v42, %v4721_v43  ;;  %v1157_v22 = vpop.f32.mrb[4].mxu0 }
 0x234   : > { %v1752_v52 = vpack.c.bf16 %v1748_v45, %v1680_v44  ;;  %v1753_v53 = vpack.c.bf16 %v1749_v47, %v1681_v46  ;;  %v1384_v20 = vcombine.low %v1360_v32, %v1376_v33  ;;  %v1452_v21 = vcombine.low %v1428_v39, %v1444_v40  ;;  %v3666_v24 = vpop.f32.mrb[5].mxu0 }
 0x235   : > { %v1731_v23 = vrot.slane %v1717_v50, %v4721_v43  ;;  %v1747_v55 = vrot.slane %v1733_v51, %v4721_v43  ;;  %v1385_v58 = vcombine.high %v1360_v32, %v1376_v33  ;;  %v1453_v59 = vcombine.high %v1428_v39, %v1444_v40  ;;  %v1160_v25 = vpop.f32.mrb[6].mxu0 }
 0x236   : > { %v2058_v56 = vsel %vm2053_vm3, %v1752_v52, 0  ;;  %v2105_v57 = vsel %vm2053_vm3, %v1753_v53, 0  ;;  %v1421_v60 = vcombine.high %v4786_v12, %v4789_v13  ;;  %v1437_v63 = vcombine.high %v4792_v14, %v1419_v15  ;;  %v3667_v26 = vpop.f32.mrb[7].mxu0 }
 0x237   : > { %3669 = vmatpush3.bf16.xpose.msra.mxu1 %v2058_v56  ;;  %3675 = vmatpush3.bf16.xpose.msra.mxu0 %v2105_v57  ;;  %v1750_v61 = vcombine.low %v1731_v23, %v1747_v55  ;;  %v1751_v62 = vcombine.high %v1731_v23, %v1747_v55  ;;  %v1682_v0 = vcombine.low %v1663_v54, %v1679_v19 }
 0x238   : > { %3680 = vmatprep.subr.bf16.mxu1 %v4200_v3  ;;  %3686 = vmatprep.subr.bf16.mxu0 %v4200_v3  ;;  %v1683_v1 = vcombine.high %v1663_v54, %v1679_v19  ;;  %v1456_v2 = vpack.c.bf16 %v1452_v21, %v1384_v20  ;;  %v1457_v4 = vpack.c.bf16 %v1453_v59, %v1385_v58 }
 0x239   : > { %v1754_v5 = vpack.c.bf16 %v1750_v61, %v1682_v0  ;;  %v1367_v7 = vrot.slane %v1353_v48, %v4721_v43  ;;  %v1383_v8 = vrot.slane %v1369_v49, %v4721_v43  ;;  %v1435_v9 = vrot.slane %v1421_v60, %v4721_v43 }
 0x23a   : > { %v1755_v6 = vpack.c.bf16 %v1751_v62, %v1683_v1  ;;  %v1451_v10 = vrot.slane %v1437_v63, %v4721_v43 }
 0x23b   : > { %v2152_v11 = vsel %vm2053_vm3, %v1754_v5, 0  ;;  %v1386_v13 = vcombine.low %v1367_v7, %v1383_v8  ;;  %v1387_v15 = vcombine.high %v1367_v7, %v1383_v8 }
 0x23c   : > { %v2199_v12 = vsel %vm2053_vm3, %v1755_v6, 0  ;;  %v1454_v14 = vcombine.low %v1435_v9, %v1451_v10  ;;  %v1455_v16 = vcombine.high %v1435_v9, %v1451_v10 }
 0x23e   : > { %3671 = vmatmul.mubr.msk.bf16.vlgmr.msra.gmra.mrb[4].mxu1 %vm2053_vm3, %v1456_v2  ;;  %3677 = vmatmul.mubr.msk.bf16.vlgmr.msra.gmra.mrb[8].mxu0 %vm2053_vm3, %v1457_v4  ;;  %v1458_v17 = vpack.c.bf16 %v1454_v14, %v1386_v13  ;;  %v1459_v18 = vpack.c.bf16 %v1455_v16, %v1387_v15  ;;  %v3543_v2 = vld [vmem:[%s5376_s8] ss:$0 sm:$0xff] }
 0x23f   : > { %3681 = vmatpush3.bf16.xpose.msra.mxu1 %v2152_v11  ;;  %3687 = vmatpush3.bf16.xpose.msra.mxu0 %v2199_v12  ;;  %v4878_v4 = vadd.f32 %v3543_v2, %v1157_v22  ;;  %v4884_v5 = vadd.f32 %v3543_v2, %v1160_v25 }
 0x240   : > { %3682 = vmatprep.mubr.msk.bf16.mxu1 %vm4201_vm1, %v4200_v3  ;;  %3688 = vmatprep.mubr.msk.bf16.mxu0 %vm4201_vm1, %v4200_v3 }
 0x241   : > { %3692 = vmatprep.subr.bf16.mxu1 %v4200_v3  ;;  %3698 = vmatprep.subr.bf16.mxu0 %v4200_v3 }
 0x246   : > { %3683 = vmatmul.mubr.msk.bf16.vlgmr.msra.gmra.mrb[8].mxu1 %vm2053_vm3, %v1458_v17  ;;  %3689 = vmatmul.mubr.msk.bf16.vlgmr.msra.gmra.mrb[12].mxu0 %vm2053_vm3, %v1459_v18 }
 0x247   : > { %3694 = vmatprep.mubr.msk.bf16.mxu1 %vm4201_vm1, %v4200_v3  ;;  %3700 = vmatprep.mubr.msk.bf16.mxu0 %vm4201_vm1, %v4200_v3 }
 0x311   : > { %v2094_v27 = vpop.f32.mrb[4].mxu1  ;;  %v2141_v28 = vpop.f32.mrb[8].mxu0 }
 0x312   : > { %v2242_v30 = vmul.f32 0.35355338, %v2094_v27  ;;  %v2244_v31 = vmul.f32 0.35355338, %v2141_v28  ;;  %v3672_v32 = vpop.f32.mrb[5].mxu1  ;;  %v3678_v33 = vpop.f32.mrb[9].mxu0 }
 0x313   : > { %v2097_v34 = vpop.f32.mrb[6].mxu1  ;;  %v2144_v35 = vpop.f32.mrb[10].mxu0 }
 0x314   : > { %v2243_v37 = vmul.f32 0.35355338, %v2097_v34  ;;  %v3673_v38 = vpop.f32.mrb[7].mxu1  ;;  %v3679_v39 = vpop.f32.mrb[11].mxu0  ;;  %v2256_v40 = vadd.f32 %v3563_v29, %v2242_v30  ;;  %v2245_v41 = vmul.f32 0.35355338, %v2144_v35  ;;  %v2258_v42 = vadd.f32 %v3563_v29, %v2244_v31 }
 0x316   : > { %v2265_v44 = vsel %vm2264_vm4, %v2256_v40, -inf  ;;  %v2257_v45 = vadd.f32 %v3563_v29, %v2243_v37  ;;  %v2271_v49 = vsel %vm2264_vm4, %v2258_v42, -inf  ;;  %v2259_v50 = vadd.f32 %v3563_v29, %v2245_v41 }
 0x317   : > { %2266 = vmax.xlane.f32.xlu0 %v2265_v44 }
 0x318   : > { %v2268_v46 = vsel %vm2264_vm4, %v2257_v45, -inf  ;;  %v2274_v57 = vsel %vm2264_vm4, %v2259_v50, -inf }
 0x319   : > { %2269 = vmax.xlane.f32.xlu1 %v2268_v46  ;;  %v2188_v47 = vpop.f32.mrb[8].mxu1  ;;  %v2235_v48 = vpop.f32.mrb[12].mxu0 }
 0x31a   : > { %v2246_v51 = vmul.f32 0.35355338, %v2188_v47  ;;  %v2248_v52 = vmul.f32 0.35355338, %v2235_v48  ;;  %v3684_v53 = vpop.f32.mrb[9].mxu1  ;;  %v3690_v54 = vpop.f32.mrb[13].mxu0 }
 0x31b   : > { %v2191_v19 = vpop.f32.mrb[10].mxu1  ;;  %2272 = vmax.xlane.f32.xlu0 %v2271_v49  ;;  %v2238_v20 = vpop.f32.mrb[14].mxu0 }
 0x31c   : > { %v2247_v21 = vmul.f32 0.35355338, %v2191_v19  ;;  %v3685_v23 = vpop.f32.mrb[11].mxu1  ;;  %v3691_v55 = vpop.f32.mrb[15].mxu0  ;;  %v2260_v56 = vadd.f32 %v3563_v29, %v2246_v51  ;;  %v2249_v58 = vmul.f32 0.35355338, %v2238_v20  ;;  %v2262_v61 = vadd.f32 %v3563_v29, %v2248_v52 }
 0x31e   : > { %v2277_v59 = vsel %vm2264_vm4, %v2260_v56, -inf  ;;  %v4867_v60 = vadd.f32 %v3563_v29, %v2247_v21  ;;  %v2283_v63 = vsel %vm2264_vm4, %v2262_v61, -inf  ;;  %v2263_v0 = vadd.f32 %v3563_v29, %v2249_v58 }
 0x31f   : > { %2278 = vmax.xlane.f32.xlu1 %v2277_v59  ;;  %2275 = vmax.xlane.f32.xlu0 %v2274_v57 }
 0x320   : > { %v2280_v62 = vsel %vm2264_vm4, %v4867_v60, -inf  ;;  %v2286_v1 = vsel %vm2264_vm4, %v2263_v0, -inf }
 0x323   : > { %2281 = vmax.xlane.f32.xlu0 %v2280_v62  ;;  %2284 = vmax.xlane.f32.xlu1 %v2283_v63 }
 0x327   : > { %2287 = vmax.xlane.f32.xlu0 %v2286_v1 }
 0x334   : > { %1758 = vrot.lane.b32.xlu1 %v4878_v4, %s4203_s0 }
 0x338   : > { %1764 = vrot.lane.b32.xlu1 %v4878_v4, %s4202_s21 }
 0x33c   : > { %1766 = vrot.lane.b32.xlu1 %v4884_v5, %s4202_s21  ;;  %s5378_s21 = smov %s5377_s16 }
 0x33d   : > { %1760 = vrot.lane.b32.xlu0 %v4884_v5, %s4203_s0  ;;  %s4207_s0 = smov 16  }
 0x341   : > { %1770 = vrot.lane.b32.xlu0 %v4878_v4, %s4204_s28 }
 0x3a4   : > { %v2267_v6 = vpop.xlane.xlu0 %2266 }
 0x3a5   : > { %v2289_v7 = vsub.f32 %v2256_v40, %v2267_v6 }
 0x3a6   : > { %v2270_v8 = vpop.xlane.xlu1 %2269 }
 0x3a7   : > { %v2297_v9 = vmul.f32 1.442695, %v2289_v7  ;;  %v2290_v10 = vsub.f32 %v2257_v45, %v2270_v8 }
 0x3a8   : > { %v2273_v11 = vpop.xlane.xlu0 %2272 }
 0x3a9   : > { %3903 = vpow2.f32 %v2297_v9  ;;  %v2299_v12 = vmul.f32 1.442695, %v2290_v10  ;;  %v2291_v13 = vsub.f32 %v2258_v42, %v2273_v11 }
 0x3ab   : > { %3905 = vpow2.f32 %v2299_v12  ;;  %v2301_v14 = vmul.f32 1.442695, %v2291_v13 }
 0x3ac   : > { %v2279_v15 = vpop.xlane.xlu1 %2278  ;;  %v2276_v16 = vpop.xlane.xlu0 %2275 }
 0x3ad   : > { %3907 = vpow2.f32 %v2301_v14  ;;  %v2293_v17 = vsub.f32 %v2260_v56, %v2279_v15  ;;  %v2292_v18 = vsub.f32 %v2259_v50, %v2276_v16 }
 0x3af   : > { %v2303_v22 = vmul.f32 1.442695, %v2292_v18  ;;  %v2305_v26 = vmul.f32 1.442695, %v2293_v17 }
 0x3b0   : > { %v2282_v24 = vpop.xlane.xlu0 %2281  ;;  %v2285_v25 = vpop.xlane.xlu1 %2284 }
 0x3b1   : > { %v2295_v27 = vsub.f32 %v2262_v61, %v2285_v25  ;;  %3909 = vpow2.f32 %v2303_v22  ;;  %v2294_v48 = vsub.f32 %v4867_v60, %v2282_v24 }
 0x3b2   : > { %3911 = vpow2.f32 %v2305_v26 }
 0x3b3   : > { %v4892_v28 = vpop.eup %3903  ;;  %v2309_v32 = vmul.f32 1.442695, %v2295_v27  ;;  %v2307_v49 = vmul.f32 1.442695, %v2294_v48 }
 0x3b4   : > { %v2288_v29 = vpop.xlane.xlu0 %2287  ;;  %v2313_v30 = vsel %vm2264_vm4, %v4892_v28, 0.0  ;;  %v1759_v53 = vpop.permute.xlu1 %1758 }
 0x3b5   : > { %v4896_v31 = vpop.eup %3905  ;;  %v2296_v33 = vsub.f32 %v2263_v0, %v2288_v29  ;;  %2314 = vadd.xlane.f32.xlu1 %v2313_v30  ;;  %3913 = vpow2.f32 %v2309_v32 }
 0x3b6   : > { %v2316_v34 = vsel %vm2264_vm4, %v4896_v31, 0.0 }
 0x3b7   : > { %v4900_v35 = vpop.eup %3907  ;;  %2317 = vadd.xlane.f32.xlu0 %v2316_v34  ;;  %v2311_v38 = vmul.f32 1.442695, %v2296_v33 }
 0x3b8   : > { %v2319_v37 = vsel %vm2264_vm4, %v4900_v35, 0.0  ;;  %v1761_v52 = vpop.permute.xlu0 %1760  ;;  %v1765_v19 = vpop.permute.xlu1 %1764 }
 0x3b9   : > { %2320 = vadd.xlane.f32.xlu1 %v2319_v37  ;;  %3915 = vpow2.f32 %v2311_v38  ;;  %v1776_v23 = vcombine.low %v4878_v4, %v1765_v19  ;;  %v1777_v55 = vcombine.high %v4878_v4, %v1765_v19 }
 0x3ba   : > { %3917 = vpow2.f32 %v2307_v49 }
 0x3bb   : > { %v4904_v39 = vpop.eup %3909  ;;  %v1784_v59 = vrot.slane %v1776_v23, %v4719_v36  ;;  %v1791_v60 = vrot.slane %v1777_v55, %v4719_v36 }
 0x3bc   : > { %v2322_v40 = vsel %vm2264_vm4, %v4904_v39, 0.0  ;;  %v4908_v41 = vpop.eup %3911  ;;  %v1771_v54 = vpop.permute.xlu0 %1770 }
 0x3bd   : > { %2323 = vadd.xlane.f32.xlu0 %v2322_v40  ;;  %v2325_v42 = vsel %vm2264_vm4, %v4908_v41, 0.0  ;;  %v1792_v20 = vcombine.low %v1759_v53, %v1771_v54  ;;  %v1793_v21 = vcombine.high %v1759_v53, %v1771_v54  ;;  %v1767_v57 = vpop.permute.xlu1 %1766 }
 0x3be   : > { %v1844_v9 = vcombine.low %v4884_v5, %v1767_v57  ;;  %v1845_v10 = vcombine.high %v4884_v5, %v1767_v57 }
 0x3bf   : > { %v4912_v44 = vpop.eup %3913  ;;  %v1800_v56 = vrot.slane %v1792_v20, %v4719_v36  ;;  %v1807_v58 = vrot.slane %v1793_v21, %v4719_v36 }
 0x3c0   : > { %v2331_v45 = vsel %vm2264_vm4, %v4912_v44, 0.0  ;;  %v1852_v22 = vrot.slane %v1844_v9, %v4719_v36  ;;  %v1859_v24 = vrot.slane %v1845_v10, %v4719_v36 }
 0x3c1   : > { %2326 = vadd.xlane.f32.xlu0 %v2325_v42  ;;  %v1808_v61 = vcombine.low %v1784_v59, %v1800_v56  ;;  %v1809_v62 = vcombine.high %v1784_v59, %v1800_v56  ;;  %v1824_v63 = vcombine.low %v1791_v60, %v1807_v58  ;;  %v1825_v0 = vcombine.high %v1791_v60, %v1807_v58 }
 0x3c3   : > { %v4916_v46 = vpop.eup %3915  ;;  %v1816_v2 = vrot.slane %v1808_v61, %v4721_v43  ;;  %v1823_v6 = vrot.slane %v1809_v62, %v4721_v43  ;;  %v1832_v4 = vrot.slane %v1824_v63, %v4721_v43  ;;  %v1839_v7 = vrot.slane %v1825_v0, %v4721_v43 }
 0x3c4   : > { %v2334_v47 = vsel %vm2264_vm4, %v4916_v46, 0.0  ;;  %v4923_v50 = vpop.eup %3917 }
 0x3c5   : > { %2332 = vadd.xlane.f32.xlu0 %v2331_v45  ;;  %v2328_v51 = vsel %vm2264_vm4, %v4923_v50, 0.0  ;;  %v1912_v12 = vcombine.low %v1816_v2, %v1823_v6  ;;  %v3555_v13 = vcombine.high %v1816_v2, %v1823_v6  ;;  %v1928_v14 = vcombine.low %v1832_v4, %v1839_v7 }
 0x3c6   : > { %v3556_v15 = vcombine.high %v1832_v4, %v1839_v7 }
 0x3c7   : > { %v1919_v26 = vrot.slane %v1912_v12, %v4719_v36  ;;  %v1927_v29 = vrot.slane %v3555_v13, %v4719_v36  ;;  %v1935_v30 = vrot.slane %v1928_v14, %v4719_v36 }
 0x3c8   : > { %v1943_v32 = vrot.slane %v3556_v15, %v4719_v36 }
 0x3c9   : > { %2335 = vadd.xlane.f32.xlu0 %v2334_v47  ;;  %v1944_v49 = vcombine.low %v1919_v26, %v1927_v29  ;;  %v1945_v60 = vcombine.high %v1919_v26, %v1927_v29 }
 0x3ca   : > { %1772 = vrot.lane.b32.xlu1 %v4884_v5, %s4204_s28  ;;  %v1961_v61 = vcombine.high %v1935_v30, %v1943_v32  ;;  %s5379_s28 = sld [smem:[#allocation39_spill]] }
 0x3cb   : > { %v1952_v58 = vrot.slane %v1944_v49, %v4721_v43 }
 0x3cc   : > { %v1975_v12 = vrot.slane %v1961_v61, %v4721_v43 }
 0x3d0   : > { %s5380_s27 = scalar_lea.vmem %s5379_s28, %s4580_s20 }
 0x3ee   : > { %2329 = vadd.xlane.f32.xlu1 %v2328_v51  ;;  %v1960_v51 = vcombine.low %v1935_v30, %v1943_v32 }
 0x3f0   : > { %v1968_v59 = vrot.slane %v1960_v51, %v4721_v43 }
 0x3f2   : > { %v1976_v14 = vcombine.low %v1952_v58, %v1968_v59 }
 0x442   : > { %v2315_v1 = vpop.xlane.xlu1 %2314 }
 0x443   : > { %3919 = vrcp.f32 %v2315_v1 }
 0x444   : > { %v2318_v11 = vpop.xlane.xlu0 %2317 }
 0x445   : > { %3921 = vrcp.f32 %v2318_v11  ;;  %v1959_v11 = vrot.slane %v1945_v60, %v4721_v43 }
 0x446   : > { %v2321_v8 = vpop.xlane.xlu1 %2320 }
 0x447   : > { %v1978_v30 = vcombine.low %v1959_v11, %v1975_v12  ;;  %v1979_v32 = vcombine.high %v1959_v11, %v1975_v12 }
 0x44a   : > { %v1773_v16 = vpop.permute.xlu1 %1772  ;;  %v2324_v25 = vpop.xlane.xlu0 %2323 }
 0x44b   : > { %v1860_v17 = vcombine.low %v1761_v52, %v1773_v16  ;;  %v1861_v18 = vcombine.high %v1761_v52, %v1773_v16  ;;  %3923 = vrcp.f32 %v2324_v25  ;;  %v1977_v16 = vcombine.high %v1952_v58, %v1968_v59 }
 0x44c   : > { %3925 = vrcp.f32 %v2321_v8 }
 0x44d   : > { %v1868_v27 = vrot.slane %v1860_v17, %v4719_v36  ;;  %v1875_v5 = vrot.slane %v1861_v18, %v4719_v36  ;;  %v3920_v57 = vpop.eup %3919 }
 0x44e   : > { %v4947_v40 = vpop.xlane.xlu0 %2326 }
 0x44f   : > { %v1876_v33 = vcombine.low %v1852_v22, %v1868_v27  ;;  %v1877_v34 = vcombine.high %v1852_v22, %v1868_v27  ;;  %v1892_v37 = vcombine.low %v1859_v24, %v1875_v5  ;;  %v1893_v38 = vcombine.high %v1859_v24, %v1875_v5  ;;  %v3922_v62 = vpop.eup %3921 }
 0x450   : > { %v4966_v18 = vmul.f32 %v3922_v62, %v4896_v31  ;;  %v4972_v5 = vmul.f32 %v3920_v57, %v4892_v28 }
 0x451   : > { %v1884_v42 = vrot.slane %v1876_v33, %v4721_v43  ;;  %v1891_v45 = vrot.slane %v1877_v34, %v4721_v43  ;;  %v1900_v47 = vrot.slane %v1892_v37, %v4721_v43  ;;  %v1907_v48 = vrot.slane %v1893_v38, %v4721_v43 }
 0x452   : > { %v2333_v20 = vpop.xlane.xlu0 %2332  ;;  %v2353_v31 = vpack.c.bf16 %v4966_v18, %v4972_v5  ;;  %3158 = vst.msk [vmem:[%s4648_s15] sm:$0xff] (!%p3590_p12), %vm2264_vm4, %v4972_v5  ;;  %3159 = vst.msk [vmem:[%s4648_s15 + $0x8] sm:$0xff] (!%p3590_p12), %vm2264_vm4, %v4966_v18 }
 0x453   : > { %v1980_v52 = vcombine.low %v1884_v42, %v1891_v45  ;;  %v3557_v53 = vcombine.high %v1884_v42, %v1891_v45  ;;  %v1996_v54 = vcombine.low %v1900_v47, %v1907_v48  ;;  %v3558_v19 = vcombine.high %v1900_v47, %v1907_v48 }
 0x454   : > { %3927 = vrcp.f32 %v2333_v20 }
 0x455   : > { %v1987_v21 = vrot.slane %v1980_v52, %v4719_v36  ;;  %v1995_v23 = vrot.slane %v3557_v53, %v4719_v36  ;;  %v2003_v55 = vrot.slane %v1996_v54, %v4719_v36  ;;  %v2011_v56 = vrot.slane %v3558_v19, %v4719_v36  ;;  %v3924_v6 = vpop.eup %3923 }
 0x456   : > { %v2336_v4 = vpop.xlane.xlu0 %2335  ;;  %v3926_v10 = vpop.eup %3925  ;;  %v4969_v22 = vmul.f32 %v3924_v6, %v4904_v39 }
 0x457   : > { %v2012_v63 = vcombine.low %v1987_v21, %v1995_v23  ;;  %v2028_v0 = vcombine.low %v2003_v55, %v2011_v56  ;;  %v2013_v1 = vcombine.high %v1987_v21, %v1995_v23  ;;  %v2029_v2 = vcombine.high %v2003_v55, %v2011_v56 }
 0x458   : > { %3929 = vrcp.f32 %v2336_v4  ;;  %v4975_v29 = vmul.f32 %v3926_v10, %v4900_v35  ;;  %3161 = vst.msk [vmem:[%s4648_s15 + $0x18] sm:$0xff] (!%p3590_p12), %vm2264_vm4, %v4969_v22 }
 0x459   : > { %v2020_v7 = vrot.slane %v2012_v63, %v4721_v43  ;;  %v2036_v8 = vrot.slane %v2028_v0, %v4721_v43  ;;  %v2027_v9 = vrot.slane %v2013_v1, %v4721_v43  ;;  %v2043_v13 = vrot.slane %v2029_v2, %v4721_v43 }
 0x45a   : > { %v2354_v39 = vpack.c.bf16 %v4969_v22, %v4975_v29  ;;  %3931 = vrcp.f32 %v4947_v40  ;;  %3160 = vst.msk [vmem:[%s4648_s15 + $0x10] sm:$0xff] (!%p3590_p12), %vm2264_vm4, %v4975_v29 }
 0x45b   : > { %v2044_v15 = vcombine.low %v2020_v7, %v2036_v8  ;;  %v2045_v17 = vcombine.high %v2020_v7, %v2036_v8  ;;  %v2046_v26 = vcombine.low %v2027_v9, %v2043_v13  ;;  %v2047_v27 = vcombine.high %v2027_v9, %v2043_v13 }
 0x45d   : > { %v2048_v24 = vpack.c.bf16 %v2044_v15, %v1976_v14  ;;  %v2049_v25 = vpack.c.bf16 %v2045_v17, %v1977_v16  ;;  %v2050_v33 = vpack.c.bf16 %v2046_v26, %v1978_v30  ;;  %v2051_v28 = vpack.c.bf16 %v2047_v27, %v1979_v32 }
 0x45e   : > { %v3928_v34 = vpop.eup %3927 }
 0x45f   : > { %3693 = vmatpush3.bf16.msra.mxu1 %v2048_v24  ;;  %3699 = vmatpush3.bf16.msra.mxu0 %v2049_v25  ;;  %v4995_v38 = vmul.f32 %v3928_v34, %v4912_v44 }
 0x460   : > { %3704 = vmatprep.subr.bf16.mxu1 %v4200_v3  ;;  %3710 = vmatprep.subr.bf16.mxu0 %v4200_v3 }
 0x461   : > { %3164 = vst.msk [vmem:[%s4648_s15 + $0x30] sm:$0xff] (!%p3590_p12), %vm2264_vm4, %v4995_v38 }
 0x462   : > { %3695 = vmatmul.mubr.msk.bf16.vlgmr.msra.gmra.mrb[12].mxu1 %vm2264_vm4, %v2353_v31  ;;  %3701 = vmatmul.mubr.msk.bf16.vlgmr.msra.gmra.mrb[16].mxu0 %vm2264_vm4, %v2354_v39  ;;  %v3930_v35 = vpop.eup %3929 }
 0x463   : > { %3705 = vmatpush3.bf16.msra.mxu1 %v2050_v33  ;;  %3711 = vmatpush3.bf16.msra.mxu0 %v2051_v28  ;;  %v4986_v37 = vmul.f32 %v3930_v35, %v4916_v46 }
 0x464   : > { %3712 = vmatprep.mubr.msk.bf16.mxu0 %vm4201_vm1, %v4200_v3  ;;  %3706 = vmatprep.mubr.msk.bf16.mxu1 %vm4201_vm1, %v4200_v3  ;;  %v3932_v45 = vpop.eup %3931 }
 0x465   : > { %3716 = vmatprep.subr.bf16.mxu1 %v4200_v3  ;;  %3724 = vmatprep.subr.bf16.mxu0 %v4200_v3  ;;  %v2356_v42 = vpack.c.bf16 %v4986_v37, %v4995_v38  ;;  %v5004_v48 = vmul.f32 %v3932_v45, %v4908_v41  ;;  %3165 = vst.msk [vmem:[%s4648_s15 + $0x38] sm:$0xff] (!%p3590_p12), %vm2264_vm4, %v4986_v37 }
 0x467   : > { %3162 = vst.msk [vmem:[%s4648_s15 + $0x20] sm:$0xff] (!%p3590_p12), %vm2264_vm4, %v5004_v48 }
 0x46a   : > { %3713 = vmatmul.mubr.msk.bf16.vlgmr.msra.gmra.mrb[20].mxu0 %vm2264_vm4, %v2356_v42 }
 0x46b   : > { %3728 = vmatprep.mubr.msk.bf16.mxu0 %vm4201_vm1, %v4200_v3 }
 0x47b   : > { %v2330_v46 = vpop.xlane.xlu1 %2329 }
 0x47c   : > { %3933 = vrcp.f32 %v2330_v46 }
 0x486   : > { %v3934_v47 = vpop.eup %3933 }
 0x487   : > { %v5007_v44 = vmul.f32 %v3934_v47, %v4923_v50 }
 0x489   : > { %v2355_v49 = vpack.c.bf16 %v5007_v44, %v5004_v48  ;;  %3163 = vst.msk [vmem:[%s4648_s15 + $0x28] sm:$0xff] (!%p3590_p12), %vm2264_vm4, %v5007_v44 }
 0x48b   : > { %3707 = vmatmul.mubr.msk.bf16.vlgmr.msra.gmra.mrb[16].mxu1 %vm2264_vm4, %v2355_v49 }
 0x48c   : > { %3720 = vmatprep.mubr.msk.bf16.mxu1 %vm4201_vm1, %v4200_v3 }
 0x535   : > { %v2394_v51 = vpop.f32.mrb[12].mxu1  ;;  %v2438_v40 = vpop.f32.mrb[16].mxu0 }
 0x536   : > { %v3696_v52 = vpop.f32.mrb[13].mxu1  ;;  %v3702_v53 = vpop.f32.mrb[17].mxu0 }
 0x537   : > { %v2397_v54 = vpop.f32.mrb[14].mxu1  ;;  %v2441_v19 = vpop.f32.mrb[18].mxu0 }
 0x538   : > { %v3697_v20 = vpop.f32.mrb[15].mxu1  ;;  %v3703_v41 = vpop.f32.mrb[19].mxu0 }
 0x53d   : > { %v2526_v21 = vpop.f32.mrb[20].mxu0 }
 0x53e   : > { %v2549_v23 = vcombine.low %v2438_v40, %v2526_v21  ;;  %v2550_v50 = vcombine.high %v2438_v40, %v2526_v21  ;;  %v3714_v55 = vpop.f32.mrb[21].mxu0 }
 0x53f   : > { %v2529_v56 = vpop.f32.mrb[22].mxu0  ;;  %v3895_v55 = vld [vmem:[%s5377_s16] sm:$0xff]  }
 0x540   : > { %v2617_v57 = vcombine.low %v2441_v19, %v2529_v56  ;;  %v2618_v58 = vcombine.high %v2441_v19, %v2529_v56  ;;  %v3715_v59 = vpop.f32.mrb[23].mxu0  ;;  %v2557_v0 = vrot.slane %v2549_v23, %v4719_v36  ;;  %v2564_v1 = vrot.slane %v2550_v50, %v4719_v36  ;;  %3717 = vmatpush3.bf16.msra.mxu1 %v3895_v55  ;;  %v3944_v55 = vld [vmem:[%s4646_s18 + $0x8] sm:$0xff] }
 0x541   : > { %3718 = vmatprep.subr.bf16.mxu1 %v4200_v3 }
 0x542   : > { %v2625_v14 = vrot.slane %v2617_v57, %v4719_v36  ;;  %v2632_v15 = vrot.slane %v2618_v58, %v4719_v36 }
 0x55e   : > { %v2482_v60 = vpop.f32.mrb[16].mxu1 }
 0x55f   : > { %v2533_v61 = vcombine.low %v2394_v51, %v2482_v60  ;;  %v2534_v62 = vcombine.high %v2394_v51, %v2482_v60  ;;  %v3708_v63 = vpop.f32.mrb[17].mxu1 }
 0x560   : > { %v2485_v2 = vpop.f32.mrb[18].mxu1 }
 0x561   : > { %v2541_v6 = vrot.slane %v2533_v61, %v4719_v36  ;;  %v2548_v4 = vrot.slane %v2534_v62, %v4719_v36  ;;  %v2601_v7 = vcombine.low %v2397_v54, %v2485_v2  ;;  %v2602_v8 = vcombine.high %v2397_v54, %v2485_v2  ;;  %v3709_v9 = vpop.f32.mrb[19].mxu1 }
 0x563   : > { %v2565_v10 = vcombine.low %v2541_v6, %v2557_v0  ;;  %v2566_v11 = vcombine.high %v2541_v6, %v2557_v0  ;;  %v2581_v12 = vcombine.low %v2548_v4, %v2564_v1  ;;  %v2582_v13 = vcombine.high %v2548_v4, %v2564_v1 }
 0x564   : > { %v2609_v16 = vrot.slane %v2601_v7, %v4719_v36  ;;  %v2616_v17 = vrot.slane %v2602_v8, %v4719_v36 }
 0x565   : > { %v2573_v24 = vrot.slane %v2565_v10, %v4721_v43  ;;  %v2580_v25 = vrot.slane %v2566_v11, %v4721_v43  ;;  %v2589_v26 = vrot.slane %v2581_v12, %v4721_v43  ;;  %v2596_v27 = vrot.slane %v2582_v13, %v4721_v43  ;;  %v3896_v13 = vld [vmem:[%s5378_s21 + $0x8] sm:$0xff]  }
 0x566   : > { %v2633_v30 = vcombine.low %v2609_v16, %v2625_v14  ;;  %v2634_v32 = vcombine.high %v2609_v16, %v2625_v14  ;;  %v2649_v31 = vcombine.low %v2616_v17, %v2632_v15  ;;  %v2650_v39 = vcombine.high %v2616_v17, %v2632_v15  ;;  %3719 = vmatpush3.bf16.msra.mxu1 %v3896_v13 }
 0x567   : > { %v2669_v33 = vcombine.low %v2573_v24, %v2580_v25  ;;  %v3568_v28 = vcombine.high %v2573_v24, %v2580_v25  ;;  %v2685_v34 = vcombine.low %v2589_v26, %v2596_v27  ;;  %v3569_v35 = vcombine.high %v2589_v26, %v2596_v27  ;;  %3732 = vmatprep.subr.bf16.mxu1 %v4200_v3 }
 0x568   : > { %v2641_v42 = vrot.slane %v2633_v30, %v4721_v43  ;;  %v2648_v46 = vrot.slane %v2634_v32, %v4721_v43  ;;  %v2657_v45 = vrot.slane %v2649_v31, %v4721_v43  ;;  %v2664_v47 = vrot.slane %v2650_v39, %v4721_v43 }
 0x569   : > { %v2676_v49 = vrot.slane %v2669_v33, %v4719_v36  ;;  %v2684_v51 = vrot.slane %v3568_v28, %v4719_v36  ;;  %v2692_v40 = vrot.slane %v2685_v34, %v4719_v36  ;;  %v2700_v52 = vrot.slane %v3569_v35, %v4719_v36 }
 0x56a   : > { %v2737_v53 = vcombine.low %v2641_v42, %v2648_v46  ;;  %v3570_v54 = vcombine.high %v2641_v42, %v2648_v46  ;;  %v2753_v19 = vcombine.low %v2657_v45, %v2664_v47  ;;  %v3571_v20 = vcombine.high %v2657_v45, %v2664_v47 }
 0x56b   : > { %v2702_v41 = vcombine.high %v2676_v49, %v2684_v51  ;;  %v2718_v21 = vcombine.high %v2692_v40, %v2700_v52  ;;  %v2701_v23 = vcombine.low %v2676_v49, %v2684_v51  ;;  %v2717_v50 = vcombine.low %v2692_v40, %v2700_v52  ;;  %v3572_v40 = vld [vmem:[%s5380_s27] ss:$0 sm:$0xff] }
 0x56c   : > { %v2744_v56 = vrot.slane %v2737_v53, %v4719_v36  ;;  %v2752_v57 = vrot.slane %v3570_v54, %v4719_v36  ;;  %v2760_v58 = vrot.slane %v2753_v19, %v4719_v36  ;;  %v2768_v59 = vrot.slane %v3571_v20, %v4719_v36 }
 0x56d   : > { %v2716_v60 = vrot.slane %v2702_v41, %v4721_v43  ;;  %v2732_v61 = vrot.slane %v2718_v21, %v4721_v43  ;;  %v2709_v62 = vrot.slane %v2701_v23, %v4721_v43  ;;  %v2725_v63 = vrot.slane %v2717_v50, %v4721_v43  ;;  %v3943_v21 = vld [vmem:[%s4646_s18] sm:$0xff] }
 0x56e   : > { %v2770_v0 = vcombine.high %v2744_v56, %v2752_v57  ;;  %v2786_v1 = vcombine.high %v2760_v58, %v2768_v59  ;;  %v2769_v2 = vcombine.low %v2744_v56, %v2752_v57  ;;  %v2785_v6 = vcombine.low %v2760_v58, %v2768_v59 }
 0x56f   : > { %v2735_v4 = vcombine.low %v2716_v60, %v2732_v61  ;;  %v2733_v7 = vcombine.low %v2709_v62, %v2725_v63  ;;  %v2734_v8 = vcombine.high %v2709_v62, %v2725_v63  ;;  %v2736_v36 = vcombine.high %v2716_v60, %v2732_v61 }
 0x570   : > { %v2784_v9 = vrot.slane %v2770_v0, %v4721_v43  ;;  %v2800_v10 = vrot.slane %v2786_v1, %v4721_v43  ;;  %v2777_v11 = vrot.slane %v2769_v2, %v4721_v43  ;;  %v2793_v12 = vrot.slane %v2785_v6, %v4721_v43 }
 0x572   : > { %v2803_v14 = vcombine.low %v2784_v9, %v2800_v10  ;;  %v2802_v15 = vcombine.high %v2777_v11, %v2793_v12  ;;  %v2801_v16 = vcombine.low %v2777_v11, %v2793_v12  ;;  %v2804_v17 = vcombine.high %v2784_v9, %v2800_v10 }
 0x574   : > { %v3879_v24 = vpack.i.bf16 %v2803_v14, %v2735_v4  ;;  %v3874_v25 = vpack.i.bf16 %v2802_v15, %v2734_v8  ;;  %v3884_v26 = vpack.i.bf16 %v2804_v17, %v2736_v36  ;;  %v3897_v4 = vld [vmem:[%s779_s30] sm:$0xff]   ;;  %v3900_v36 = vld [vmem:[%s4631_s25 + $0x8] sm:$0xff]  }
 0x575   : > { %3725 = vmatpush3.bf16.msra.mxu0 %v3897_v4  ;;  %v3899_v8 = vld [vmem:[%s4631_s25] sm:$0xff]  }
 0x576   : > { %3880 = vrot.lane.b32.xlu0 %v3879_v24, %s4207_s0  ;;  %3875 = vrot.lane.b32.xlu1 %v3874_v25, %s4208_s24 }
 0x577   : > { %3726 = vmatprep.subr.bf16.mxu0 %v4200_v3 }
 0x57a   : > { %3885 = vrot.lane.b32.xlu1 %v3884_v26, %s4209_s6 }
 0x5e8   : > { %v3881_v43 = vpop.permute.xlu0 %3880  ;;  %v3876_v27 = vpop.permute.xlu1 %3875 }
 0x5e9   : > { %v3878_v30 = vunpack.i.h.bf16 %v3876_v27  ;;  %v3877_v32 = vunpack.i.l.bf16 %v3876_v27  ;;  %v3883_v31 = vunpack.i.h.bf16 %v3881_v43  ;;  %v3882_v39 = vunpack.i.l.bf16 %v3881_v43  ;;  %v3577_v43 = vld [vmem:[%s5384_s22] ss:$0 sm:$0xff] }
 0x5eb   : > { %v2829_v33 = vsel %vm2053_vm3, %v2733_v7, %v3877_v32  ;;  %v2830_v28 = vsel %vm2053_vm3, %v2801_v16, %v3878_v30  ;;  %v3898_v7 = vld [vmem:[%s779_s30 + $0x8] sm:$0xff]   ;;  %v3576_v16 = vld [vmem:[%s5382_s14] ss:$0 sm:$0xff] }
 0x5ec   : > { %v3886_v34 = vpop.permute.xlu1 %3885  ;;  %v2831_v46 = vsel %vm2264_vm4, %v2829_v33, %v3882_v39  ;;  %v2832_v45 = vsel %vm2264_vm4, %v2830_v28, %v3883_v31  ;;  %3727 = vmatpush3.bf16.msra.mxu0 %v3898_v7  ;;  %v3901_v39 = vld [vmem:[%s4631_s25 + $0x10] sm:$0xff]   ;;  %v3902_v33 = vld [vmem:[%s4631_s25 + $0x18] sm:$0xff]   ;;  %v3578_v28 = vld [vmem:[%s940_s29] ss:$0 sm:$0xff] }
 0x5ed   : > { %v3888_v35 = vunpack.i.h.bf16 %v3886_v34  ;;  %v3887_v42 = vunpack.i.l.bf16 %v3886_v34 }
 0x5ef   : > { %v2834_v47 = vsel %vm2833_vm5, %v2831_v46, %v3887_v42  ;;  %v2835_v49 = vsel %vm2833_vm5, %v2832_v45, %v3888_v35 }
 0x5f0   : > { %v2836_v51 = vpack.c.bf16 %v2835_v49, %v2834_v47 }
 0x5f2   : > { %3721 = vmatmul.mubr.msk.bf16.vlgmr.msra.gmra.mrb[20].mxu1 %vm991_vm2, %v2836_v51 }
 0x5f3   : > { %3740 = vmatprep.mubr.msk.bf16.mxu1 %vm4201_vm1, %v4200_v3  ;;  %3733 = vmatpush3.bf16.msra.mxu1 %v3899_v8 }
 0x5f4   : > { %3734 = vmatprep.subr.bf16.mxu1 %v4200_v3 }
 0x5f7   : > { %3735 = vmatpush3.bf16.msra.mxu1 %v3900_v36 }
 0x5f8   : > { %3736 = vmatprep.subr.bf16.mxu1 %v4200_v3 }
 0x5fb   : > { %3737 = vmatpush3.bf16.msra.mxu1 %v3901_v39 }
 0x5fc   : > { %3738 = vmatprep.subr.bf16.mxu1 %v4200_v3  ;;  %v3582_v3 = vld [vmem:[%s948_s9] ss:$0 sm:$0xff] }
 0x5ff   : > { %3739 = vmatpush3.bf16.msra.mxu1 %v3902_v33 }
 0x6c5   : > { %v2897_v52 = vpop.f32.mrb[20].mxu1 }
 0x6c6   : > { %v2898_v53 = vadd.f32 %v3572_v40, %v2897_v52  ;;  %v3722_v54 = vpop.f32.mrb[21].mxu1 }
 0x6c7   : > { %v2900_v19 = vpop.f32.mrb[22].mxu1 }
 0x6c8   : > { %v2901_v20 = vadd.f32 %v3572_v40, %v2900_v19  ;;  %v3723_v41 = vpop.f32.mrb[23].mxu1  ;;  %v2904_v23 = vadd.f32 %v3943_v21, %v2898_v53 }
 0x6ca   : > { %v2908_v50 = vsel %vm991_vm2, %v2904_v23, 0.0  ;;  %v2905_v56 = vadd.f32 %v3944_v55, %v2901_v20 }
 0x6cb   : > { %2909 = vadd.xlane.f32.xlu1 %v2908_v50 }
 0x6cc   : > { %v2911_v57 = vsel %vm991_vm2, %v2905_v56, 0.0 }
 0x6cd   : > { %2912 = vadd.xlane.f32.xlu0 %v2911_v57 }
 0x758   : > { %v2910_v58 = vpop.xlane.xlu1 %2909 }
 0x759   : > { %v2915_v59 = vmul.f32 0.03125, %v2910_v58 }
 0x75a   : > { %v2913_v60 = vpop.xlane.xlu0 %2912 }
 0x75b   : > { %v2917_v61 = vsub.f32 %v2904_v23, %v2915_v59  ;;  %v2916_v62 = vmul.f32 0.03125, %v2913_v60 }
 0x75d   : > { %v2918_v63 = vsub.f32 %v2905_v56, %v2916_v62  ;;  %v2919_v0 = vmul.f32 %v2917_v61, %v2917_v61 }
 0x75f   : > { %v2921_v1 = vsel %vm991_vm2, %v2919_v0, 0.0  ;;  %v2920_v2 = vmul.f32 %v2918_v63, %v2918_v63 }
 0x760   : > { %2922 = vadd.xlane.f32.xlu0 %v2921_v1 }
 0x761   : > { %v2924_v6 = vsel %vm991_vm2, %v2920_v2, 0.0 }
 0x762   : > { %2925 = vadd.xlane.f32.xlu1 %v2924_v6 }
 0x7ed   : > { %v2923_v9 = vpop.xlane.xlu0 %2922 }
 0x7ee   : > { %v2927_v10 = vmul.f32 0.03125, %v2923_v9 }
 0x7ef   : > { %v2926_v11 = vpop.xlane.xlu1 %2925 }
 0x7f0   : > { %v2929_v12 = vadd.f32 1e-12, %v2927_v10  ;;  %v2928_v13 = vmul.f32 0.03125, %v2926_v11  ;;  %v3588_v10 = vld [vmem:[%s951_s10] ss:$0 sm:$0xff] }
 0x7f2   : > { %3935 = vrsqrt.f32 %v2929_v12  ;;  %v2930_v14 = vadd.f32 1e-12, %v2928_v13  ;;  %v3589_v13 = vld [vmem:[%s954_s11] ss:$0 sm:$0xff] }
 0x7f4   : > { %3937 = vrsqrt.f32 %v2930_v14 }
 0x7fc   : > { %v3936_v15 = vpop.eup %3935 }
 0x7fd   : > { %v2933_v17 = vmul.f32 %v3936_v15, %v2917_v61 }
 0x7fe   : > { %v3938_v24 = vpop.eup %3937 }
 0x7ff   : > { %v2941_v25 = vmul.f32 %v3576_v16, %v2933_v17  ;;  %v2934_v26 = vmul.f32 %v3938_v24, %v2918_v63 }
 0x801   : > { %v2942_v27 = vmul.f32 %v3576_v16, %v2934_v26  ;;  %v2949_v30 = vadd.f32 %v3577_v43, %v2941_v25 }
 0x803   : > { %v2950_v32 = vadd.f32 %v3577_v43, %v2942_v27 }
 0x805   : > { %v2951_v31 = vpack.c.bf16 %v2950_v32, %v2949_v30 }
 0x807   : > { %3729 = vmatmul.mubr.msk.bf16.vlgmr.msra.gmra.mrb[24].mxu0 %vm991_vm2, %v2951_v31 }
 0x8da   : > { %v3012_v34 = vpop.f32.mrb[24].mxu0 }
 0x8db   : > { %v3013_v35 = vadd.f32 %v3578_v28, %v3012_v34  ;;  %v3730_v42 = vpop.f32.mrb[25].mxu0 }
 0x8dc   : > { %v3015_v46 = vpop.f32.mrb[26].mxu0 }
 0x8dd   : > { %v3016_v45 = vadd.f32 %v3578_v28, %v3015_v46  ;;  %v3731_v47 = vpop.f32.mrb[27].mxu0  ;;  %v3019_v49 = vmax.f32 %v3013_v35, 0.0 }
 0x8df   : > { %v3020_v51 = vmax.f32 %v3016_v45, 0.0 }
 0x8e1   : > { %v3021_v40 = vpack.c.bf16 %v3020_v51, %v3019_v49 }
 0x8e3   : > { %3741 = vmatmul.mubr.msk.bf16.vlgmr.msra.gmra.mrb[24].mxu1 %vm3061_vm6, %v3021_v40 }
 0x9b6   : > { %v3099_v52 = vpop.f32.mrb[24].mxu1 }
 0x9b7   : > { %v3100_v53 = vadd.f32 %v3582_v3, %v3099_v52  ;;  %v3742_v54 = vpop.f32.mrb[25].mxu1 }
 0x9b8   : > { %v3102_v19 = vpop.f32.mrb[26].mxu1 }
 0x9b9   : > { %v3103_v20 = vadd.f32 %v3582_v3, %v3102_v19  ;;  %v3743_v41 = vpop.f32.mrb[27].mxu1  ;;  %v3106_v21 = vadd.f32 %v3100_v53, %v2949_v30 }
 0x9bb   : > { %v3110_v23 = vsel %vm991_vm2, %v3106_v21, 0.0  ;;  %v3107_v50 = vadd.f32 %v3103_v20, %v2950_v32 }
 0x9bc   : > { %3111 = vadd.xlane.f32.xlu0 %v3110_v23 }
 0x9bd   : > { %v3113_v55 = vsel %vm991_vm2, %v3107_v50, 0.0 }
 0x9be   : > { %3114 = vadd.xlane.f32.xlu1 %v3113_v55 }
 0xa49   : > { %v3112_v56 = vpop.xlane.xlu0 %3111 }
 0xa4a   : > { %v3116_v57 = vmul.f32 0.03125, %v3112_v56 }
 0xa4b   : > { %v3115_v58 = vpop.xlane.xlu1 %3114 }
 0xa4c   : > { %v3118_v59 = vsub.f32 %v3106_v21, %v3116_v57  ;;  %v3117_v60 = vmul.f32 0.03125, %v3115_v58 }
 0xa4e   : > { %v3119_v61 = vsub.f32 %v3107_v50, %v3117_v60  ;;  %v3120_v62 = vmul.f32 %v3118_v59, %v3118_v59 }
 0xa50   : > { %v3122_v63 = vsel %vm991_vm2, %v3120_v62, 0.0  ;;  %v3121_v0 = vmul.f32 %v3119_v61, %v3119_v61 }
 0xa51   : > { %3123 = vadd.xlane.f32.xlu0 %v3122_v63 }
 0xa52   : > { %v3125_v1 = vsel %vm991_vm2, %v3121_v0, 0.0 }
 0xa53   : > { %3126 = vadd.xlane.f32.xlu1 %v3125_v1 }
 0xade   : > { %v3124_v2 = vpop.xlane.xlu0 %3123 }
 0xadf   : > { %v3128_v6 = vmul.f32 0.03125, %v3124_v2 }
 0xae0   : > { %v3127_v4 = vpop.xlane.xlu1 %3126 }
 0xae1   : > { %v3130_v7 = vadd.f32 1e-12, %v3128_v6  ;;  %v3129_v8 = vmul.f32 0.03125, %v3127_v4 }
 0xae3   : > { %3939 = vrsqrt.f32 %v3130_v7  ;;  %v3131_v36 = vadd.f32 1e-12, %v3129_v8 }
 0xae5   : > { %3941 = vrsqrt.f32 %v3131_v36 }
 0xaed   : > { %v3940_v9 = vpop.eup %3939 }
 0xaee   : > { %v3134_v11 = vmul.f32 %v3940_v9, %v3118_v59 }
 0xaef   : > { %v3942_v12 = vpop.eup %3941 }
 0xaf0   : > { %v3142_v14 = vmul.f32 %v3588_v10, %v3134_v11  ;;  %v3135_v15 = vmul.f32 %v3942_v12, %v3119_v61  ;;  %3157 = sbr.rel (%p3590_p12) target bundleno = 2807 (0xaf7), region = 112 }
 0xaf2   : > { %v3150_v16 = vadd.f32 %v3589_v13, %v3142_v14  ;;  %v3143_v17 = vmul.f32 %v3588_v10, %v3135_v15 }
 0xaf4   : > { %3152 = vst.msk [vmem:[%s4646_s18] sm:$0xff] %vm991_vm2, %v3150_v16  ;;  %v3151_v24 = vadd.f32 %v3589_v13, %v3143_v17 }
 0xaf6   : > { %3153 = vst.msk [vmem:[%s4646_s18 + $0x8] sm:$0xff] %vm991_vm2, %v3151_v24 }
 0xaf7 PF: > { %s5389_s10 = sld [smem:[#allocation20_spill]]  ;;  %s5390_s2 = sld [smem:[#allocation30_spill]] }
 0xaf8   : > { %s5391_s20 = sld [smem:[#allocation28_spill]]  ;;  %s5392_s13 = sld [smem:[#allocation48_spill]] }
 0xaf9   : > { %s3185_s23 = sshll.u32 %s4646_s18, 4  ;;  %s4210_s17 = smov [#allocation8]   ;;  %s5154_s23 = int_to_ptr.vmem [resolvable:$true] %s3185_s23 }
 0xafa   : > { %s4035_s26 = scalar_lea.vmem %s5154_s23, 256  ;;  %s4039_s1 = sshll.u32 %s4210_s17, 4  ;;  %s4040_s1 = int_to_ptr.vmem [resolvable:$false] %s4039_s1 }
 0xafb   : > { %p4036_p5 = scmp.ne.s32.totalorder %s5154_s23, %s4035_s26  ;;  %s4041_s22 = scalar_lea.vmem %s4040_s1, 512 }
 0xafc   : > { %p4042_p2 = scmp.lt.s32.totalorder %s5154_s23, %s4040_s1  ;;  %p4043_p13 = scmp.lt.s32.totalorder %s4041_s22, %s4035_s26 }
 0xafd   : > { %s3606_s11 = sshll.u32 %s5389_s10, 8  ;;  %s3167_s14 = scalar_lea.sflag [#allocation4], %s5390_s2 }
 0xafe   : > { %s5151_s30 = scalar_lea.hbm %s5392_s13, %s3606_s11  ;;  %p5393_p9 = scmp.ne.s32.totalorder %s5391_s20, 0 }
 0xaff   : > { %p4044_p7 = por %p4043_p13, %p4042_p2 }
 0xb00   : > { %p4037_p0 = pnand %p4036_p5, %p5393_p9 }
 0xb02   : > { %p4038_p1 = pneg %p4037_p0 }
 0xb04   : > { %p4045_p10 = pnand %p4044_p7, %p4038_p1 }
 0xb06   : > { %4048 = shalt.err (!%p4045_p10)
}
 0xb07   : > { %s4049_s18 = scalar_lea.hbm %s5151_s30, 256  ;;  %s4053_s8 = scalar_lea.hbm %s5392_s13, 512 }
 0xb08   : > { %p4050_p6 = scmp.ne.s32.totalorder %s5151_s30, %s4049_s18  ;;  %p4054_p11 = scmp.lt.u32.totalorder %s5151_s30, %s5392_s13 }
 0xb09   : > { %p4055_p8 = scmp.lt.u32.totalorder %s4053_s8, %s4049_s18  ;;  %p4057_p5 = scmp.lt.u32.totalorder %s4049_s18, %s5151_s30 }
 0xb0a   : > { %p4051_p3 = pnand %p4050_p6, %p5393_p9 }
 0xb0b   : > { %p4056_p12 = por %p4055_p8, %p4054_p11 }
 0xb0c   : > { %p4052_p4 = pneg %p4051_p3 }
 0xb0d   : > { %p4058_p0 = por %p4057_p5, %p4056_p12 }
 0xb0f   : > { %p4059_p1 = pnand %p4058_p0, %p4052_p4 }
 0xb11   : > { %4062 = shalt.err (!%p4059_p1)
}
 0xb12   : > { %s4211_s21 = smov 128   ;;  %s3607_s9 = sshll.u32 %s5389_s10, 10 }
 0xb13   : > { %3750 = dma.vmem_to_hbm [thread:$0]  (%p5393_p9), %s5154_s23, 256, %s5151_s30, %s3167_s14, %s4211_s21, %s4211_s21, %s4208_s24  }
 0xb14   : > { %s5394_s6 = sld [smem:[#allocation49_spill]]  ;;  %s3201_s12 = sshll.u32 %s4648_s15, 4  ;;  %s5190_s12 = int_to_ptr.vmem [resolvable:$true] %s3201_s12 }
 0xb15   : > { %s3172_s11 = scalar_lea.sflag [#allocation10], %s5390_s2  ;;  %s4063_s28 = scalar_lea.vmem %s5190_s12, 1024 }
 0xb16   : > { %p4064_p2 = scmp.ne.s32.totalorder %s5190_s12, %s4063_s28  ;;  %s4212_s27 = smov [#allocation9]  }
 0xb17   : > { %s4067_s30 = sshll.u32 %s4212_s27, 4  ;;  %s4068_s30 = int_to_ptr.vmem [resolvable:$false] %s4067_s30 }
 0xb18   : > { %p4065_p13 = pnand %p4064_p2, %p5393_p9  ;;  %s4069_s10 = scalar_lea.vmem %s4068_s30, 2048 }
 0xb19   : > { %p4070_p10 = scmp.lt.s32.totalorder %s5190_s12, %s4068_s30  ;;  %p4071_p6 = scmp.lt.s32.totalorder %s4069_s10, %s4063_s28 }
 0xb1a   : > { %s5187_s19 = scalar_lea.hbm %s5394_s6, %s3607_s9  ;;  %p4066_p7 = pneg %p4065_p13 }
 0xb1b   : > { %p4072_p3 = por %p4071_p6, %p4070_p10 }
 0xb1d   : > { %p4073_p4 = pnand %p4072_p3, %p4066_p7 }
 0xb1f   : > { %4076 = shalt.err (!%p4073_p4)
}
 0xb20   : > { %s4077_s15 = scalar_lea.hbm %s5187_s19, 1024  ;;  %s4081_s26 = scalar_lea.hbm %s5394_s6, 2048 }
 0xb21   : > { %p4078_p11 = scmp.ne.s32.totalorder %s5187_s19, %s4077_s15  ;;  %p4082_p5 = scmp.lt.u32.totalorder %s5187_s19, %s5394_s6 }
 0xb22   : > { %p4083_p0 = scmp.lt.u32.totalorder %s4081_s26, %s4077_s15  ;;  %p4085_p2 = scmp.lt.u32.totalorder %s4077_s15, %s5187_s19 }
 0xb23   : > { %p4079_p8 = pnand %p4078_p11, %p5393_p9 }
 0xb24   : > { %p4084_p1 = por %p4083_p0, %p4082_p5 }
 0xb25   : > { %p4080_p12 = pneg %p4079_p8 }
 0xb26   : > { %p4086_p13 = por %p4085_p2, %p4084_p1 }
 0xb28   : > { %p4087_p7 = pnand %p4086_p13, %p4080_p12 }
 0xb2a   : > { %4090 = shalt.err (!%p4087_p7)
}
 0xb2b   : > { %3751 = dma.vmem_to_hbm [thread:$0]  (%p5393_p9), %s5190_s12, 1024, %s5187_s19, %s3172_s11, %s4211_s21, %s4211_s21, %s4208_s24  }
 0xb2c PF: > { %s5395_s22 = sld [smem:[#allocation23_spill]]  ;;  %s5396_s18 = sld [smem:[#allocation15_spill]] }
 0xb2d   : > { %s5397_s3 = sld [smem:[#allocation29_spill]] }
 0xb32   : > { %p3772_p10 = scmp.ge.s32.totalorder %s5395_s22, 2  ;;  %s3216_s4 = sand.u32 1, %s5396_s18  }
 0xb33   : > { %p5398_p6 = scmp.ne.s32.totalorder %s5397_s3, 0  ;;  %s3217_s8 = scalar_lea.sflag [#allocation4], %s3216_s4 }
 0xb35   : > { %p3765_p3 = pnand %p3772_p10, %p5398_p6 }
 0xb37   : > { %4144 = dma.done.wait (!%p3765_p3), %s3217_s8, 256  }
 0xb38   : > { %4146 = vsyncadd (!%p3765_p3), %s3217_s8, 4294967040  ;;  %s3226_s20 = scalar_lea.sflag [#allocation10], %s3216_s4 }
 0xb39   : > { %4148 = dma.done.wait (!%p3765_p3), %s3226_s20, 1024  }
 0xb3a   : > { %4150 = vsyncadd (!%p3765_p3), %s3226_s20, 4294966272  ;;  %s42_s3 = sadd.s32 1, %s5395_s22   ;;  %s5399_s0 = sld [smem:[#allocation16_spill]] }
 0xb3b   : > { %p39_p4 = scmp.ge.s32.totalorder %s42_s3, 6   ;;  %s5400_s30 = sld [smem:[#allocation17_spill]] }
 0xb3c   : > { %s5401_s20 = sld [smem:[#allocation27_spill]]  ;;  %s5402_s21 = sld [smem:[#allocation18_spill]] }
 0xb3d   : > { %s5403_s1 = sld [smem:[#allocation19_spill]]  ;;  %s5404_s22 = sld [smem:[#allocation26_spill]] }
 0xb3e   : > { %s5405_s2 = sld [smem:[#allocation21_spill]]  ;;  %s5406_s23 = sld [smem:[#allocation22_spill]] }
 0xb3f   : > { %s5407_s24 = sld [smem:[#allocation24_spill]]  ;;  %s5408_s25 = sld [smem:[#allocation25_spill]] }
 0xb40   :  { %41 = sbr.rel (!%p39_p4) target bundleno = 32 (0x20), region = 231 }
 0xb47   :  { %3231 = vsyncpa [#allocation3], 1 }
 0xb48   :  { %3233 = vsyncpa [#allocation3 + $0x1], 1 }
 0xb49   :  { %3234 = vsyncpa [#allocation6], 1 }
 0xb4a   :  { %3236 = vsyncpa [#allocation6 + $0x1], 1 }
 0xb4b   :  { %3237 = vsyncpa [#allocation4], 1 }
 0xb4c   :  { %3239 = vsyncpa [#allocation4 + $0x1], 1 }
 0xb4d   :  { %3240 = vsyncpa [#allocation10], 1 }
 0xb4e   :  { %3242 = vsyncpa [#allocation10 + $0x1], 1 }

</bundles_post_ra>
